<compile_context>
chip_gen: v7x
topology: tpu7x:2x2x1
jax: 0.10.0
libtpu: 0.0.40
codegen_flags: <defaults>
</compile_context>

<pallas_src>
import jax
import jax.numpy as jnp
from jax.experimental import pallas as pl
from jax.experimental.pallas import tpu as pltpu


def get_conv_output_size(size_in, kernel_size, padding=0, stride=1, dilation=1):
    return (size_in + 2 * padding - dilation * (kernel_size - 1) - 1) // stride + 1


# ---------------------------------------------------------------------------
# im2col (pure data movement, no FLOPs) -- done in the JAX wrapper.
# TODO(synk): patch extraction could be moved in-kernel via manual strided
# DMA, but at these sizes it is pure indexing and is left to XLA.
# ---------------------------------------------------------------------------
def _im2col(x_nchw, kh, kw, stride, padding, row_order):
    """Columns are ordered (c_in, ky, kx) to match weight.reshape(C_out, -1).

    row_order:
      "nhw": rows ordered (n, ho, wo)  -> row = n*Ho*Wo + ho*Wo + wo
      "hwn": rows ordered (ho, wo, n)  -> row = (ho*Wo + wo)*N + n
    """
    n, c, h, w = x_nchw.shape
    ho = (h + 2 * padding - kh) // stride + 1
    wo = (w + 2 * padding - kw) // stride + 1
    xp = jnp.pad(x_nchw, ((0, 0), (0, 0), (padding, padding), (padding, padding)))
    patches = []
    for ky in range(kh):
        for kx in range(kw):
            patches.append(
                xp[:, :, ky:ky + (ho - 1) * stride + 1:stride,
                         kx:kx + (wo - 1) * stride + 1:stride])
    p = jnp.stack(patches, axis=0)            # (kh*kw, n, c, ho, wo)
    if row_order == "nhw":
        p = p.transpose(1, 3, 4, 2, 0)        # (n, ho, wo, c, kh*kw)
        return p.reshape(n * ho * wo, c * kh * kw), ho, wo
    else:
        p = p.transpose(3, 4, 1, 2, 0)        # (ho, wo, n, c, kh*kw)
        return p.reshape(ho * wo * n, c * kh * kw), ho, wo


# ---------------------------------------------------------------------------
# Kernel 1: out = relu(x @ w + b), tiled over rows of x.
# ---------------------------------------------------------------------------
def _linear_relu_kernel(x_ref, w_ref, b_ref, o_ref):
    acc = jnp.dot(x_ref[...], w_ref[...], preferred_element_type=jnp.float32)
    o_ref[...] = jnp.maximum(acc + b_ref[...], 0.0)


def _linear_relu(x, w, b_row, *, block_m=512):
    m, k = x.shape
    _, n_out = w.shape
    bm = m if m <= block_m else block_m
    assert m % bm == 0, (m, bm)
    return pl.pallas_call(
        _linear_relu_kernel,
        out_shape=jax.ShapeDtypeStruct((m, n_out), jnp.float32),
        grid=(m // bm,),
        in_specs=[
            pl.BlockSpec((bm, k), lambda i: (i, 0)),
            pl.BlockSpec((k, n_out), lambda i: (0, 0)),
            pl.BlockSpec((1, n_out), lambda i: (0, 0)),
        ],
        out_specs=pl.BlockSpec((bm, n_out), lambda i: (i, 0)),
        compiler_params=pltpu.CompilerParams(dimension_semantics=("parallel",)),
    )(x, w, b_row)


# ---------------------------------------------------------------------------
# Kernel 2: fused conv2-as-matmul + fc1 + dueling value/advantage heads.
# ---------------------------------------------------------------------------
def _make_head_kernel(n_batch, n_pos, c_out, hidden):
    # cols2 rows are ordered (spatial position p, batch n).  fc1's weight rows
    # have been pre-permuted so that row block p corresponds to the c_out
    # channels at spatial position p (matching PyTorch's (C, H, W) flatten).
    def head_kernel(cols2_ref, w2_ref, b2_ref, wfc1_ref, bfc1_ref,
                    wv1_ref, bv1_ref, wv2_ref, bv2_ref,
                    wa1_ref, ba1_ref, wa2_ref, ba2_ref, out_ref):
        # conv2: (n_pos*n_batch, C1*k*k) @ (C1*k*k, c_out) + bias, ReLU
        c2 = jnp.dot(cols2_ref[...], w2_ref[...],
                     preferred_element_type=jnp.float32) + b2_ref[...]
        c2 = jnp.maximum(c2, 0.0)                        # (n_pos*n_batch, c_out)

        # fc1: flatten + matmul, expressed as a sum over spatial positions so
        # that no in-kernel transpose/reshape is required.
        acc = jnp.zeros((n_batch, hidden), jnp.float32)
        for p in range(n_pos):
            acc = acc + jnp.dot(
                c2[p * n_batch:(p + 1) * n_batch, :],
                wfc1_ref[p * c_out:(p + 1) * c_out, :],
                preferred_element_type=jnp.float32)
        h = jnp.maximum(acc + bfc1_ref[...], 0.0)        # (n_batch, hidden)

        # value head
        v = jnp.dot(h, wv1_ref[...], preferred_element_type=jnp.float32) + bv1_ref[...]
        v = jnp.maximum(v, 0.0)
        # final value layer has a single output -> lane reduction on the VPU/XLU
        value = jnp.sum(v * wv2_ref[...], axis=1, keepdims=True) + bv2_ref[...]   # (n_batch, 1)

        # advantage head
        a = jnp.dot(h, wa1_ref[...], preferred_element_type=jnp.float32) + ba1_ref[...]
        a = jnp.maximum(a, 0.0)
        adv = jnp.dot(a, wa2_ref[...], preferred_element_type=jnp.float32) + ba2_ref[...]  # (n_batch, A)

        adv_mean = jnp.sum(adv, axis=1, keepdims=True) * (1.0 / adv.shape[1])
        out_ref[...] = value + adv - adv_mean

    return head_kernel


# ---------------------------------------------------------------------------
# Full DQN forward pass.
# ---------------------------------------------------------------------------
@jax.jit
def dqn_forward(x, params):
    (w_c1, b_c1, w_c2, b_c2, w_fc1, b_fc1,
     w_v1, b_v1, w_v2, b_v2, w_a1, b_a1, w_a2, b_a2) = params
    n = x.shape[0]
    c1 = w_c1.shape[0]          # 16
    c2 = w_c2.shape[0]          # 32
    hidden = w_fc1.shape[0]     # 512
    num_actions = w_a2.shape[0]

    # ---- conv1 + ReLU: im2col -> Pallas matmul kernel ----
    cols1, h1, w1 = _im2col(x, w_c1.shape[2], w_c1.shape[3],
                            stride=4, padding=2, row_order="nhw")
    w1m = w_c1.reshape(c1, -1).T                            # (C*8*8, 16)
    y1 = _linear_relu(cols1, w1m, b_c1.reshape(1, -1))      # (n*h1*w1, 16)
    y1_nchw = y1.reshape(n, h1, w1, c1).transpose(0, 3, 1, 2)

    # ---- conv2 + fc1 + dueling heads: one fused Pallas kernel ----
    cols2, h2, w2 = _im2col(y1_nchw, w_c2.shape[2], w_c2.shape[3],
                            stride=2, padding=1, row_order="hwn")
    n_pos = h2 * w2
    w2m = w_c2.reshape(c2, -1).T                            # (16*4*4, 32)
    # Fold PyTorch's (C, H, W) flatten order into fc1's weights:
    # permuted row (p*c2 + c) holds original fc1 column (c*n_pos + p).
    wfc1p = (w_fc1.T.reshape(c2, n_pos, hidden)
             .transpose(1, 0, 2).reshape(c2 * n_pos, hidden))

    head_kernel = _make_head_kernel(n_batch=n, n_pos=n_pos, c_out=c2, hidden=hidden)
    vmem = pl.BlockSpec(memory_space=pltpu.MemorySpace.VMEM)
    q = pl.pallas_call(
        head_kernel,
        out_shape=jax.ShapeDtypeStruct((n, num_actions), jnp.float32),
        in_specs=[vmem] * 13,
        out_specs=vmem,
    )(cols2, w2m, b_c2.reshape(1, -1), wfc1p, b_fc1.reshape(1, -1),
      w_v1.T, b_v1.reshape(1, -1), w_v2.reshape(1, -1), b_v2.reshape(1, -1),
      w_a1.T, b_a1.reshape(1, -1), w_a2.T, b_a2.reshape(1, -1))
    return q


# ---------------------------------------------------------------------------
# Deterministic parameter init (PyTorch-style uniform(-1/sqrt(fan_in), ...)).
# ---------------------------------------------------------------------------
def init_params(key, frame_shape, num_actions):
    c, h, w = frame_shape
    h1 = get_conv_output_size(h, 8, stride=4, padding=2)
    w1 = get_conv_output_size(w, 8, stride=4, padding=2)
    h2 = get_conv_output_size(h1, 4, stride=2, padding=1)
    w2 = get_conv_output_size(w1, 4, stride=2, padding=1)
    feats = 32 * h2 * w2
    ks = jax.random.split(key, 14)

    def u(k, shape, fan_in):
        bound = 1.0 / (fan_in ** 0.5)
        return jax.random.uniform(k, shape, jnp.float32, -bound, bound)

    w_c1 = u(ks[0], (16, c, 8, 8), c * 64);      b_c1 = u(ks[1], (16,), c * 64)
    w_c2 = u(ks[2], (32, 16, 4, 4), 16 * 16);    b_c2 = u(ks[3], (32,), 16 * 16)
    w_fc1 = u(ks[4], (512, feats), feats);       b_fc1 = u(ks[5], (512,), feats)
    w_v1 = u(ks[6], (128, 512), 512);            b_v1 = u(ks[7], (128,), 512)
    w_v2 = u(ks[8], (1, 128), 128);              b_v2 = u(ks[9], (1,), 128)
    w_a1 = u(ks[10], (128, 512), 512);           b_a1 = u(ks[11], (128,), 512)
    w_a2 = u(ks[12], (num_actions, 128), 128);   b_a2 = u(ks[13], (num_actions,), 128)
    return (w_c1, b_c1, w_c2, b_c2, w_fc1, b_fc1,
            w_v1, b_v1, w_v2, b_v2, w_a1, b_a1, w_a2, b_a2)


# ---------------------------------------------------------------------------
# Pure-JAX reference matching the PyTorch forward exactly.
# ---------------------------------------------------------------------------
def dqn_ref(x, params):
    (w_c1, b_c1, w_c2, b_c2, w_fc1, b_fc1,
     w_v1, b_v1, w_v2, b_v2, w_a1, b_a1, w_a2, b_a2) = params
    hp = jax.lax.Precision.HIGHEST
    o = jax.lax.conv_general_dilated(x, w_c1, (4, 4), ((2, 2), (2, 2)),
                                     dimension_numbers=("NCHW", "OIHW", "NCHW"),
                                     precision=hp)
    o = jax.nn.relu(o + b_c1.reshape(1, -1, 1, 1))
    o = jax.lax.conv_general_dilated(o, w_c2, (2, 2), ((1, 1), (1, 1)),
                                     dimension_numbers=("NCHW", "OIHW", "NCHW"),
                                     precision=hp)
    o = jax.nn.relu(o + b_c2.reshape(1, -1, 1, 1))
    f = o.reshape(o.shape[0], -1)
    h = jax.nn.relu(jnp.dot(f, w_fc1.T, precision=hp) + b_fc1)
    v = jax.nn.relu(jnp.dot(h, w_v1.T, precision=hp) + b_v1)
    v = jnp.dot(v, w_v2.T, precision=hp) + b_v2
    a = jax.nn.relu(jnp.dot(h, w_a1.T, precision=hp) + b_a1)
    a = jnp.dot(a, w_a2.T, precision=hp) + b_a2
    return v + a - a.mean(axis=1, keepdims=True)


if __name__ == "__main__":
    frame_shape = (4, 16, 16)   # (C, H, W)
    num_actions = 6
    batch = 2

    key = jax.random.PRNGKey(0)
    k_x, k_p = jax.random.split(key)
    x = jax.random.uniform(k_x, (batch,) + frame_shape, dtype=jnp.float32)
    params = init_params(k_p, frame_shape, num_actions)

    q = dqn_forward(x, params)
    q = jax.block_until_ready(q)

    q_ref = dqn_ref(x, params)
    assert q.shape == (batch, num_actions), q.shape
    max_err = float(jnp.max(jnp.abs(q - q_ref)))
    assert jnp.allclose(q, q_ref, atol=5e-4, rtol=5e-4), max_err
    print("KERNEL_OK")
</pallas_src>

<mosaic_0001>
module attributes {stable_mosaic.version = 11 : i64} {
  func.func @_linear_relu_kernel(%arg0: i32, %arg1: memref<32x256xf32, #tpu.memory_space<vmem>>, %arg2: memref<256x16xf32, #tpu.memory_space<vmem>>, %arg3: memref<1x16xf32, #tpu.memory_space<vmem>>, %arg4: memref<32x16xf32, #tpu.memory_space<vmem>>) attributes {dimension_semantics = [#tpu.dimension_semantics<parallel>], iteration_bounds = array<i64: 1>, scalar_prefetch = 0 : i64, scratch_operands = 0 : i64, tpu.core_type = #tpu.core_type<tc>, window_params = [{transform_indices = @transform_0, window_bounds = array<i64: 32, 256>}, {pipeline_mode = #tpu.pipeline_mode<synchronous>, transform_indices = @transform_1, window_bounds = array<i64: 256, 16>}, {pipeline_mode = #tpu.pipeline_mode<synchronous>, transform_indices = @transform_2, window_bounds = array<i64: 1, 16>}, {transform_indices = @transform_3, window_bounds = array<i64: 32, 16>}]} {
    %c0 = arith.constant 0 : index
    %c0_0 = arith.constant 0 : index
    %0 = vector.load %arg1[%c0, %c0_0] : memref<32x256xf32, #tpu.memory_space<vmem>>, vector<32x256xf32>
    %c0_1 = arith.constant 0 : index
    %c0_2 = arith.constant 0 : index
    %1 = vector.load %arg2[%c0_1, %c0_2] : memref<256x16xf32, #tpu.memory_space<vmem>>, vector<256x16xf32>
    %cst = arith.constant dense<0.000000e+00> : vector<32x16xf32>
    %2 = tpu.matmul %0, %1, %cst {dimension_numbers = #tpu.dot_dimension_numbers<[1], [0], [0], [1], [0, 0, 1, 1], [], []>} : vector<32x256xf32>, vector<256x16xf32>, vector<32x16xf32> -> vector<32x16xf32>
    %c0_3 = arith.constant 0 : index
    %c0_4 = arith.constant 0 : index
    %3 = vector.load %arg3[%c0_3, %c0_4] : memref<1x16xf32, #tpu.memory_space<vmem>>, vector<1x16xf32>
    %4 = vector.broadcast %3 : vector<1x16xf32> to vector<32x16xf32>
    %5 = arith.addf %2, %4 : vector<32x16xf32>
    %cst_5 = arith.constant 0.000000e+00 : f32
    %6 = vector.broadcast %cst_5 : f32 to vector<32x16xf32>
    %7 = arith.maximumf %5, %6 : vector<32x16xf32>
    %c0_6 = arith.constant 0 : index
    %c0_7 = arith.constant 0 : index
    %8 = vector.load %arg4[%c0_6, %c0_7] : memref<32x16xf32, #tpu.memory_space<vmem>>, vector<32x16xf32>
    tpu.vector_store %arg4[%c0_6, %c0_7], %7 {strides = array<i32>} : memref<32x16xf32, #tpu.memory_space<vmem>>, vector<32x16xf32>,
    return
  }
  func.func @transform_0(%arg0: i32) -> (i32, i32) {
    %c0_i32 = arith.constant 0 : i32
    %c0_i32_0 = arith.constant 0 : i32
    return %arg0, %c0_i32 : i32, i32
  }
  func.func @transform_1(%arg0: i32) -> (i32, i32) {
    %c0_i32 = arith.constant 0 : i32
    %c0_i32_0 = arith.constant 0 : i32
    %c0_i32_1 = arith.constant 0 : i32
    return %c0_i32, %c0_i32_0 : i32, i32
  }
  func.func @transform_2(%arg0: i32) -> (i32, i32) {
    %c0_i32 = arith.constant 0 : i32
    %c0_i32_0 = arith.constant 0 : i32
    %c0_i32_1 = arith.constant 0 : i32
    return %c0_i32, %c0_i32_0 : i32, i32
  }
  func.func @transform_3(%arg0: i32) -> (i32, i32) {
    %c0_i32 = arith.constant 0 : i32
    %c0_i32_0 = arith.constant 0 : i32
    return %arg0, %c0_i32 : i32, i32
  }
}

module attributes {stable_mosaic.version = 11 : i64} {
  func.func @head_kernel(%arg0: memref<8x256xf32, #tpu.memory_space<vmem>>, %arg1: memref<256x32xf32, #tpu.memory_space<vmem>>, %arg2: memref<1x32xf32, #tpu.memory_space<vmem>>, %arg3: memref<128x512xf32, #tpu.memory_space<vmem>>, %arg4: memref<1x512xf32, #tpu.memory_space<vmem>>, %arg5: memref<512x128xf32, #tpu.memory_space<vmem>>, %arg6: memref<1x128xf32, #tpu.memory_space<vmem>>, %arg7: memref<1x128xf32, #tpu.memory_space<vmem>>, %arg8: memref<1x1xf32, #tpu.memory_space<vmem>>, %arg9: memref<512x128xf32, #tpu.memory_space<vmem>>, %arg10: memref<1x128xf32, #tpu.memory_space<vmem>>, %arg11: memref<128x6xf32, #tpu.memory_space<vmem>>, %arg12: memref<1x6xf32, #tpu.memory_space<vmem>>, %arg13: memref<2x6xf32, #tpu.memory_space<vmem>>) attributes {dimension_semantics = [], scalar_prefetch = 0 : i64, scratch_operands = 0 : i64, tpu.core_type = #tpu.core_type<tc>} {
    %c0 = arith.constant 0 : index
    %c0_0 = arith.constant 0 : index
    %0 = vector.load %arg0[%c0, %c0_0] : memref<8x256xf32, #tpu.memory_space<vmem>>, vector<8x256xf32>
    %c0_1 = arith.constant 0 : index
    %c0_2 = arith.constant 0 : index
    %1 = vector.load %arg1[%c0_1, %c0_2] : memref<256x32xf32, #tpu.memory_space<vmem>>, vector<256x32xf32>
    %cst = arith.constant dense<0.000000e+00> : vector<8x32xf32>
    %2 = tpu.matmul %0, %1, %cst {dimension_numbers = #tpu.dot_dimension_numbers<[1], [0], [0], [1], [0, 0, 1, 1], [], []>} : vector<8x256xf32>, vector<256x32xf32>, vector<8x32xf32> -> vector<8x32xf32>
    %c0_3 = arith.constant 0 : index
    %c0_4 = arith.constant 0 : index
    %3 = vector.load %arg2[%c0_3, %c0_4] : memref<1x32xf32, #tpu.memory_space<vmem>>, vector<1x32xf32>
    %4 = vector.broadcast %3 : vector<1x32xf32> to vector<8x32xf32>
    %5 = arith.addf %2, %4 : vector<8x32xf32>
    %cst_5 = arith.constant 0.000000e+00 : f32
    %6 = vector.broadcast %cst_5 : f32 to vector<8x32xf32>
    %7 = arith.maximumf %5, %6 : vector<8x32xf32>
    %cst_6 = arith.constant 0.000000e+00 : f32
    %8 = vector.broadcast %cst_6 : f32 to vector<2x512xf32>
    %9 = vector.extract_strided_slice %7 {offsets = [0, 0], sizes = [2, 32], strides = [1, 1]} : vector<8x32xf32> to vector<2x32xf32>
    %c0_7 = arith.constant 0 : index
    %c0_8 = arith.constant 0 : index
    %10 = vector.load %arg3[%c0_7, %c0_8] : memref<128x512xf32, #tpu.memory_space<vmem>>, vector<32x512xf32>
    %cst_9 = arith.constant dense<0.000000e+00> : vector<2x512xf32>
    %11 = tpu.matmul %9, %10, %cst_9 {dimension_numbers = #tpu.dot_dimension_numbers<[1], [0], [0], [1], [0, 0, 1, 1], [], []>} : vector<2x32xf32>, vector<32x512xf32>, vector<2x512xf32> -> vector<2x512xf32>
    %12 = arith.addf %8, %11 : vector<2x512xf32>
    %13 = vector.extract_strided_slice %7 {offsets = [2, 0], sizes = [2, 32], strides = [1, 1]} : vector<8x32xf32> to vector<2x32xf32>
    %c32 = arith.constant 32 : index
    %c0_10 = arith.constant 0 : index
    %14 = vector.load %arg3[%c32, %c0_10] : memref<128x512xf32, #tpu.memory_space<vmem>>, vector<32x512xf32>
    %cst_11 = arith.constant dense<0.000000e+00> : vector<2x512xf32>
    %15 = tpu.matmul %13, %14, %cst_11 {dimension_numbers = #tpu.dot_dimension_numbers<[1], [0], [0], [1], [0, 0, 1, 1], [], []>} : vector<2x32xf32>, vector<32x512xf32>, vector<2x512xf32> -> vector<2x512xf32>
    %16 = arith.addf %12, %15 : vector<2x512xf32>
    %17 = vector.extract_strided_slice %7 {offsets = [4, 0], sizes = [2, 32], strides = [1, 1]} : vector<8x32xf32> to vector<2x32xf32>
    %c64 = arith.constant 64 : index
    %c0_12 = arith.constant 0 : index
    %18 = vector.load %arg3[%c64, %c0_12] : memref<128x512xf32, #tpu.memory_space<vmem>>, vector<32x512xf32>
    %cst_13 = arith.constant dense<0.000000e+00> : vector<2x512xf32>
    %19 = tpu.matmul %17, %18, %cst_13 {dimension_numbers = #tpu.dot_dimension_numbers<[1], [0], [0], [1], [0, 0, 1, 1], [], []>} : vector<2x32xf32>, vector<32x512xf32>, vector<2x512xf32> -> vector<2x512xf32>
    %20 = arith.addf %16, %19 : vector<2x512xf32>
    %21 = vector.extract_strided_slice %7 {offsets = [6, 0], sizes = [2, 32], strides = [1, 1]} : vector<8x32xf32> to vector<2x32xf32>
    %c96 = arith.constant 96 : index
    %c0_14 = arith.constant 0 : index
    %22 = vector.load %arg3[%c96, %c0_14] : memref<128x512xf32, #tpu.memory_space<vmem>>, vector<32x512xf32>
    %cst_15 = arith.constant dense<0.000000e+00> : vector<2x512xf32>
    %23 = tpu.matmul %21, %22, %cst_15 {dimension_numbers = #tpu.dot_dimension_numbers<[1], [0], [0], [1], [0, 0, 1, 1], [], []>} : vector<2x32xf32>, vector<32x512xf32>, vector<2x512xf32> -> vector<2x512xf32>
    %24 = arith.addf %20, %23 : vector<2x512xf32>
    %c0_16 = arith.constant 0 : index
    %c0_17 = arith.constant 0 : index
    %25 = vector.load %arg4[%c0_16, %c0_17] : memref<1x512xf32, #tpu.memory_space<vmem>>, vector<1x512xf32>
    %26 = vector.broadcast %25 : vector<1x512xf32> to vector<2x512xf32>
    %27 = arith.addf %24, %26 : vector<2x512xf32>
    %cst_18 = arith.constant 0.000000e+00 : f32
    %28 = vector.broadcast %cst_18 : f32 to vector<2x512xf32>
    %29 = arith.maximumf %27, %28 : vector<2x512xf32>
    %c0_19 = arith.constant 0 : index
    %c0_20 = arith.constant 0 : index
    %30 = vector.load %arg5[%c0_19, %c0_20] : memref<512x128xf32, #tpu.memory_space<vmem>>, vector<512x128xf32>
    %cst_21 = arith.constant dense<0.000000e+00> : vector<2x128xf32>
    %31 = tpu.matmul %29, %30, %cst_21 {dimension_numbers = #tpu.dot_dimension_numbers<[1], [0], [0], [1], [0, 0, 1, 1], [], []>} : vector<2x512xf32>, vector<512x128xf32>, vector<2x128xf32> -> vector<2x128xf32>
    %c0_22 = arith.constant 0 : index
    %c0_23 = arith.constant 0 : index
    %32 = vector.load %arg6[%c0_22, %c0_23] : memref<1x128xf32, #tpu.memory_space<vmem>>, vector<1x128xf32>
    %33 = vector.broadcast %32 : vector<1x128xf32> to vector<2x128xf32>
    %34 = arith.addf %31, %33 : vector<2x128xf32>
    %cst_24 = arith.constant 0.000000e+00 : f32
    %35 = vector.broadcast %cst_24 : f32 to vector<2x128xf32>
    %36 = arith.maximumf %34, %35 : vector<2x128xf32>
    %c0_25 = arith.constant 0 : index
    %c0_26 = arith.constant 0 : index
    %37 = vector.load %arg7[%c0_25, %c0_26] : memref<1x128xf32, #tpu.memory_space<vmem>>, vector<1x128xf32>
    %38 = vector.broadcast %37 : vector<1x128xf32> to vector<2x128xf32>
    %39 = arith.mulf %36, %38 : vector<2x128xf32>
    %cst_27 = arith.constant dense<0.000000e+00> : vector<2xf32>
    %40 = vector.multi_reduction <add>, %39, %cst_27 [1] : vector<2x128xf32> to vector<2xf32>
    %41 = vector.shape_cast %40 : vector<2xf32> to vector<2x1xf32>
    %c0_28 = arith.constant 0 : index
    %c0_29 = arith.constant 0 : index
    %42 = vector.load %arg8[%c0_28, %c0_29] : memref<1x1xf32, #tpu.memory_space<vmem>>, vector<1x1xf32>
    %43 = vector.broadcast %42 : vector<1x1xf32> to vector<2x1xf32>
    %44 = arith.addf %41, %43 : vector<2x1xf32>
    %c0_30 = arith.constant 0 : index
    %c0_31 = arith.constant 0 : index
    %45 = vector.load %arg9[%c0_30, %c0_31] : memref<512x128xf32, #tpu.memory_space<vmem>>, vector<512x128xf32>
    %cst_32 = arith.constant dense<0.000000e+00> : vector<2x128xf32>
    %46 = tpu.matmul %29, %45, %cst_32 {dimension_numbers = #tpu.dot_dimension_numbers<[1], [0], [0], [1], [0, 0, 1, 1], [], []>} : vector<2x512xf32>, vector<512x128xf32>, vector<2x128xf32> -> vector<2x128xf32>
    %c0_33 = arith.constant 0 : index
    %c0_34 = arith.constant 0 : index
    %47 = vector.load %arg10[%c0_33, %c0_34] : memref<1x128xf32, #tpu.memory_space<vmem>>, vector<1x128xf32>
    %48 = vector.broadcast %47 : vector<1x128xf32> to vector<2x128xf32>
    %49 = arith.addf %46, %48 : vector<2x128xf32>
    %cst_35 = arith.constant 0.000000e+00 : f32
    %50 = vector.broadcast %cst_35 : f32 to vector<2x128xf32>
    %51 = arith.maximumf %49, %50 : vector<2x128xf32>
    %c0_36 = arith.constant 0 : index
    %c0_37 = arith.constant 0 : index
    %52 = vector.load %arg11[%c0_36, %c0_37] : memref<128x6xf32, #tpu.memory_space<vmem>>, vector<128x6xf32>
    %cst_38 = arith.constant dense<0.000000e+00> : vector<2x6xf32>
    %53 = tpu.matmul %51, %52, %cst_38 {dimension_numbers = #tpu.dot_dimension_numbers<[1], [0], [0], [1], [0, 0, 1, 1], [], []>} : vector<2x128xf32>, vector<128x6xf32>, vector<2x6xf32> -> vector<2x6xf32>
    %c0_39 = arith.constant 0 : index
    %c0_40 = arith.constant 0 : index
    %54 = vector.load %arg12[%c0_39, %c0_40] : memref<1x6xf32, #tpu.memory_space<vmem>>, vector<1x6xf32>
    %55 = vector.broadcast %54 : vector<1x6xf32> to vector<2x6xf32>
    %56 = arith.addf %53, %55 : vector<2x6xf32>
    %cst_41 = arith.constant dense<0.000000e+00> : vector<2xf32>
    %57 = vector.multi_reduction <add>, %56, %cst_41 [1] : vector<2x6xf32> to vector<2xf32>
    %58 = vector.shape_cast %57 : vector<2xf32> to vector<2x1xf32>
    %cst_42 = arith.constant 0.166666672 : f32
    %59 = vector.broadcast %cst_42 : f32 to vector<2x1xf32>
    %60 = arith.mulf %58, %59 : vector<2x1xf32>
    %61 = vector.broadcast %44 : vector<2x1xf32> to vector<2x6xf32>
    %62 = arith.addf %61, %56 : vector<2x6xf32>
    %63 = vector.broadcast %60 : vector<2x1xf32> to vector<2x6xf32>
    %64 = arith.subf %62, %63 : vector<2x6xf32>
    %c0_43 = arith.constant 0 : index
    %c0_44 = arith.constant 0 : index
    %65 = vector.load %arg13[%c0_43, %c0_44] : memref<2x6xf32, #tpu.memory_space<vmem>>, vector<2x6xf32>
    tpu.vector_store %arg13[%c0_43, %c0_44], %64 {strides = array<i32>} : memref<2x6xf32, #tpu.memory_space<vmem>>, vector<2x6xf32>,
    return
  }
}

</mosaic_0001>

<bundles_post_ra>
// kernel: dqn_forward.2
= control target key start
LH: loop header
LB: loop body
LE: loop exit
PB: predicated region body
PF: predicated region fallthrough
CT: control target
= control target key end

     0   :  { %vm150_vm0 = vcmask 130048   ;;  %s407_s1 = inlined_call_operand.vmem [shape: f32[256,16], index: 1, kind: input, shape index: {}]   ;;  %s408_s0 = inlined_call_operand.vmem [shape: f32[32,256], index: 0, kind: input, shape index: {}]   ;;  %s409_s2 = inlined_call_operand.vmem [shape: f32[1,16], index: 2, kind: input, shape index: {}]   ;;  %s410_s3 = inlined_call_operand.vmem [shape: f32[32,16], index: 3, kind: output, shape index: {}]  }
   0x1   :  { %v38_v0 = vld [vmem:[%s407_s1 + $0x80] sm:$0xff]  ;;  %v39_v1 = vld [vmem:[%s407_s1 + $0x88] sm:$0xff]  ;;  %v40_v5 = vld [vmem:[%s407_s1 + $0x90] sm:$0xff] }
   0x2   :  { %v22_v2 = vld [vmem:[%s407_s1] sm:$0xff]  ;;  %v204_v3 = vpack.c.bf16 %v39_v1, %v38_v0  ;;  %v23_v4 = vld [vmem:[%s407_s1 + $0x8] sm:$0xff]  ;;  %v41_v6 = vld [vmem:[%s407_s1 + $0x98] sm:$0xff] }
   0x3   :  { %v206_v7 = vpack.c.bf16 %v23_v4, %v22_v2  ;;  %v208_v8 = vpack.c.bf16 %v41_v6, %v40_v5  ;;  %v24_v9 = vld [vmem:[%s407_s1 + $0x10] sm:$0xff]  ;;  %v25_v10 = vld [vmem:[%s407_s1 + $0x18] sm:$0xff]  ;;  %v42_v11 = vld [vmem:[%s407_s1 + $0xa0] sm:$0xff] }
   0x4   :  { %205 = vmatprep.subr.bf16.mxu0 %v204_v3  ;;  %236 = vmatprep.subr.bf16.mxu1 %v204_v3  ;;  %v43_v12 = vld [vmem:[%s407_s1 + $0xa8] sm:$0xff]  ;;  %v210_v13 = vpack.c.bf16 %v25_v10, %v24_v9  ;;  %v26_v15 = vld [vmem:[%s407_s1 + $0x20] sm:$0xff]  ;;  %v44_v17 = vld [vmem:[%s407_s1 + $0xb0] sm:$0xff] }
   0x5   :  { %207 = vmatpush3.bf16.msra.mxu0 %v206_v7  ;;  %244 = vmatpush3.bf16.msra.mxu1 %v206_v7  ;;  %v212_v14 = vpack.c.bf16 %v43_v12, %v42_v11  ;;  %v27_v16 = vld [vmem:[%s407_s1 + $0x28] sm:$0xff]  ;;  %v45_v18 = vld [vmem:[%s407_s1 + $0xb8] sm:$0xff]  ;;  %v28_v21 = vld [vmem:[%s407_s1 + $0x30] sm:$0xff] }
   0x6   :  { %209 = vmatprep.subr.bf16.mxu0 %v208_v8  ;;  %237 = vmatprep.subr.bf16.mxu1 %v208_v8  ;;  %v214_v19 = vpack.c.bf16 %v27_v16, %v26_v15  ;;  %v216_v20 = vpack.c.bf16 %v45_v18, %v44_v17  ;;  %v29_v22 = vld [vmem:[%s407_s1 + $0x38] sm:$0xff]  ;;  %v46_v23 = vld [vmem:[%s407_s1 + $0xc0] sm:$0xff]  ;;  %v47_v24 = vld [vmem:[%s407_s1 + $0xc8] sm:$0xff] }
   0x7   :  { %v15_v25 = vld [vmem:[%s408_s0 + $0x8] sm:$0xff]  ;;  %v218_v27 = vpack.c.bf16 %v29_v22, %v28_v21  ;;  %v220_v28 = vpack.c.bf16 %v47_v24, %v46_v23  ;;  %v30_v29 = vld [vmem:[%s407_s1 + $0x40] sm:$0xff]  ;;  %v48_v31 = vld [vmem:[%s407_s1 + $0xd0] sm:$0xff] }
   0x8   :  { %125 = vmatprep.mubr.f32.mxu0 %v15_v25  ;;  %v19_v26 = vld [vmem:[%s408_s0 + $0x28] sm:$0xff]  ;;  %v49_v32 = vld [vmem:[%s407_s1 + $0xd8] sm:$0xff]  ;;  %v32_v35 = vld [vmem:[%s407_s1 + $0x50] sm:$0xff] }
   0x9   :  { %211 = vmatpush3.bf16.msra.mxu0 %v210_v13  ;;  %245 = vmatpush3.bf16.msra.mxu1 %v210_v13  ;;  %v31_v30 = vld [vmem:[%s407_s1 + $0x48] sm:$0xff]  ;;  %v224_v34 = vpack.c.bf16 %v49_v32, %v48_v31  ;;  %v33_v36 = vld [vmem:[%s407_s1 + $0x58] sm:$0xff]  ;;  %v50_v37 = vld [vmem:[%s407_s1 + $0xe0] sm:$0xff] }
   0xa   :  { %213 = vmatprep.subr.bf16.mxu0 %v212_v14  ;;  %238 = vmatprep.subr.bf16.mxu1 %v212_v14  ;;  %v222_v33 = vpack.c.bf16 %v31_v30, %v30_v29  ;;  %v51_v38 = vld [vmem:[%s407_s1 + $0xe8] sm:$0xff]  ;;  %v226_v39 = vpack.c.bf16 %v33_v36, %v32_v35  ;;  %v34_v41 = vld [vmem:[%s407_s1 + $0x60] sm:$0xff]  ;;  %v52_v43 = vld [vmem:[%s407_s1 + $0xf0] sm:$0xff] }
   0xb   :  { %135 = vmatprep.mubr.f32.mxu1 %v19_v26  ;;  %v228_v40 = vpack.c.bf16 %v51_v38, %v50_v37  ;;  %v35_v42 = vld [vmem:[%s407_s1 + $0x68] sm:$0xff]  ;;  %v53_v44 = vld [vmem:[%s407_s1 + $0xf8] sm:$0xff]  ;;  %v36_v47 = vld [vmem:[%s407_s1 + $0x70] sm:$0xff] }
   0xc   :  { %v230_v45 = vpack.c.bf16 %v35_v42, %v34_v41  ;;  %v232_v46 = vpack.c.bf16 %v53_v44, %v52_v43  ;;  %v37_v48 = vld [vmem:[%s407_s1 + $0x78] sm:$0xff]  ;;  %v14_v50 = vld [vmem:[%s408_s0] sm:$0xff]  ;;  %v16_v54 = vld [vmem:[%s408_s0 + $0x10] sm:$0xff] }
   0xd   :  { %215 = vmatpush3.bf16.msra.mxu0 %v214_v19  ;;  %246 = vmatpush3.bf16.msra.mxu1 %v214_v19  ;;  %v234_v49 = vpack.c.bf16 %v37_v48, %v36_v47  ;;  %v18_v51 = vld [vmem:[%s408_s0 + $0x20] sm:$0xff]  ;;  %v17_v52 = vld [vmem:[%s408_s0 + $0x18] sm:$0xff]  ;;  %v20_v55 = vld [vmem:[%s408_s0 + $0x30] sm:$0xff] }
   0xe   :  { %217 = vmatprep.subr.bf16.mxu0 %v216_v20  ;;  %239 = vmatprep.subr.bf16.mxu1 %v216_v20  ;;  %v21_v53 = vld [vmem:[%s408_s0 + $0x38] sm:$0xff]  ;;  %v159_v58 = vld [vmem:[%s409_s2] ss:$0 sm:$0xff] }
  0x11   :  { %219 = vmatpush3.bf16.msra.mxu0 %v218_v27  ;;  %247 = vmatpush3.bf16.msra.mxu1 %v218_v27 }
  0x12   :  { %221 = vmatprep.subr.bf16.mxu0 %v220_v28  ;;  %240 = vmatprep.subr.bf16.mxu1 %v220_v28 }
  0x15   :  { %223 = vmatpush3.bf16.msra.mxu0 %v222_v33  ;;  %248 = vmatpush3.bf16.msra.mxu1 %v222_v33 }
  0x16   :  { %225 = vmatprep.subr.bf16.mxu0 %v224_v34  ;;  %241 = vmatprep.subr.bf16.mxu1 %v224_v34 }
  0x19   :  { %227 = vmatpush3.bf16.msra.mxu0 %v226_v39  ;;  %249 = vmatpush3.bf16.msra.mxu1 %v226_v39 }
  0x1a   :  { %229 = vmatprep.subr.bf16.mxu0 %v228_v40  ;;  %242 = vmatprep.subr.bf16.mxu1 %v228_v40 }
  0x1d   :  { %231 = vmatpush3.bf16.msra.mxu0 %v230_v45  ;;  %250 = vmatpush3.bf16.msra.mxu1 %v230_v45 }
  0x1e   :  { %233 = vmatprep.subr.bf16.mxu0 %v232_v46  ;;  %243 = vmatprep.subr.bf16.mxu1 %v232_v46 }
  0x21   :  { %235 = vmatpush3.bf16.msra.mxu0 %v234_v49  ;;  %251 = vmatpush3.bf16.msra.mxu1 %v234_v49 }
  0x24   :  { %126 = vmatmul.mubr.f32.vlgmr.msra.gmra.mrb[0].mxu0 %v14_v50  ;;  %136 = vmatmul.mubr.f32.vlgmr.msra.gmra.mrb[0].mxu1 %v18_v51 }
  0x25   :  { %130 = vmatprep.mubr.f32.mxu0 %v17_v52  ;;  %140 = vmatprep.mubr.f32.mxu1 %v21_v53 }
  0x28   :  { %131 = vmatmul.mubr.f32.gmra.mrb[2].mxu0 %v16_v54  ;;  %141 = vmatmul.mubr.f32.gmra.mrb[2].mxu1 %v20_v55 }
  0xf7   :  { %v192_v56 = vpop.f32.mrb[0].mxu0  ;;  %v198_v57 = vpop.f32.mrb[0].mxu1 }
  0xf8   :  { %v193_v59 = vpop.f32.mrb[1].mxu0  ;;  %v199_v60 = vpop.f32.mrb[1].mxu1 }
  0xf9   :  { %v194_v61 = vadd.f32 %v193_v59, %v192_v56  ;;  %v200_v62 = vadd.f32 %v199_v60, %v198_v57 }
  0xfb   :  { %v128_v63 = vadd.f32 %v194_v61, %v159_v58  ;;  %v138_v0 = vadd.f32 %v200_v62, %v159_v58  ;;  %v195_v1 = vpop.f32.mrb[2].mxu0  ;;  %v201_v2 = vpop.f32.mrb[2].mxu1 }
  0xfc   :  { %v196_v3 = vpop.f32.mrb[3].mxu0  ;;  %v202_v4 = vpop.f32.mrb[3].mxu1 }
  0xfd   :  { %v146_v5 = vmax.f32 %v128_v63, 0.0  ;;  %v148_v6 = vmax.f32 %v138_v0, 0.0  ;;  %v197_v7 = vadd.f32 %v196_v3, %v195_v1  ;;  %v203_v8 = vadd.f32 %v202_v4, %v201_v2 }
  0xff   :  { %151 = vst.msk [vmem:[%s410_s3] sm:$0xff] %vm150_vm0, %v146_v5  ;;  %153 = vst.msk [vmem:[%s410_s3 + $0x10] sm:$0xff] %vm150_vm0, %v148_v6  ;;  %v133_v9 = vadd.f32 %v197_v7, %v159_v58  ;;  %v143_v10 = vadd.f32 %v203_v8, %v159_v58 }
 0x101   :  { %v147_v11 = vmax.f32 %v133_v9, 0.0  ;;  %v149_v12 = vmax.f32 %v143_v10, 0.0 }
 0x103   :  { %152 = vst.msk [vmem:[%s410_s3 + $0x8] sm:$0xff] %vm150_vm0, %v147_v11  ;;  %154 = vst.msk [vmem:[%s410_s3 + $0x18] sm:$0xff] %vm150_vm0, %v149_v12 }

// kernel: dqn_forward.3
= control target key start
LH: loop header
LB: loop body
LE: loop exit
PB: predicated region body
PF: predicated region fallthrough
CT: control target
= control target key end

     0   :  { %s2818_s0 = inlined_call_operand.vmem [shape: f32[8,256], index: 0, kind: input, shape index: {}]   ;;  %s2819_s1 = inlined_call_operand.vmem [shape: f32[256,32], index: 1, kind: input, shape index: {}]   ;;  %s2820_s2 = inlined_call_operand.vmem [shape: f32[1,32], index: 2, kind: input, shape index: {}]   ;;  %s2821_s3 = inlined_call_operand.vmem [shape: f32[128,512], index: 3, kind: input, shape index: {}]   ;;  %s2822_s4 = inlined_call_operand.vmem [shape: f32[1,512], index: 4, kind: input, shape index: {}]   ;;  %s2823_s5 = inlined_call_operand.vmem [shape: f32[512,128], index: 5, kind: input, shape index: {}]   ;;  %s2824_s6 = inlined_call_operand.vmem [shape: f32[1,128], index: 6, kind: input, shape index: {}]   ;;  %s2825_s7 = inlined_call_operand.vmem [shape: f32[1,128], index: 7, kind: input, shape index: {}]   ;;  %s2826_s8 = inlined_call_operand.<no memory space> [shape: f32[1,1], index: 8, kind: input, shape index: {}]   ;;  %s2827_s9 = inlined_call_operand.vmem [shape: f32[512,128], index: 9, kind: input, shape index: {}]   ;;  %s2828_s10 = inlined_call_operand.vmem [shape: f32[1,128], index: 10, kind: input, shape index: {}]   ;;  %s2829_s11 = inlined_call_operand.vmem [shape: f32[128,6], index: 11, kind: input, shape index: {}]   ;;  %s2830_s12 = inlined_call_operand.vmem [shape: f32[1,6], index: 12, kind: input, shape index: {}]   ;;  %s2831_s13 = inlined_call_operand.hbm [shape: f32[2,6], index: 13, kind: output, shape index: {}]  }
   0x1   :  { %v18_v0 = vstv %s2826_s8 }
   0x2   :  { %19 = vst [vmem:[#allocation2] sm:$0x1] %v18_v0 }
   0x3   :  { %v65_v1 = vld [vmem:[%s2819_s1 + $0x80] sm:$0xff]  ;;  %v66_v2 = vld [vmem:[%s2819_s1 + $0x88] sm:$0xff]  ;;  %v67_v6 = vld [vmem:[%s2819_s1 + $0x90] sm:$0xff] }
   0x4   :  { %v49_v3 = vld [vmem:[%s2819_s1] sm:$0xff]  ;;  %v1647_v4 = vpack.c.bf16 %v66_v2, %v65_v1  ;;  %v50_v5 = vld [vmem:[%s2819_s1 + $0x8] sm:$0xff]  ;;  %v68_v7 = vld [vmem:[%s2819_s1 + $0x98] sm:$0xff] }
   0x5   :  { %v1649_v8 = vpack.c.bf16 %v50_v5, %v49_v3  ;;  %v1651_v9 = vpack.c.bf16 %v68_v7, %v67_v6  ;;  %v51_v10 = vld [vmem:[%s2819_s1 + $0x10] sm:$0xff]  ;;  %v52_v11 = vld [vmem:[%s2819_s1 + $0x18] sm:$0xff]  ;;  %v69_v12 = vld [vmem:[%s2819_s1 + $0xa0] sm:$0xff] }
   0x6   :  { %1648 = vmatprep.subr.bf16.mxu0 %v1647_v4  ;;  %v70_v13 = vld [vmem:[%s2819_s1 + $0xa8] sm:$0xff]  ;;  %v1653_v14 = vpack.c.bf16 %v52_v11, %v51_v10  ;;  %v53_v16 = vld [vmem:[%s2819_s1 + $0x20] sm:$0xff]  ;;  %v71_v18 = vld [vmem:[%s2819_s1 + $0xb0] sm:$0xff] }
   0x7   :  { %1650 = vmatpush3.bf16.msra.mxu0 %v1649_v8  ;;  %v1655_v15 = vpack.c.bf16 %v70_v13, %v69_v12  ;;  %v54_v17 = vld [vmem:[%s2819_s1 + $0x28] sm:$0xff]  ;;  %v72_v19 = vld [vmem:[%s2819_s1 + $0xb8] sm:$0xff]  ;;  %v55_v22 = vld [vmem:[%s2819_s1 + $0x30] sm:$0xff] }
   0x8   :  { %1652 = vmatprep.subr.bf16.mxu0 %v1651_v9  ;;  %v1657_v20 = vpack.c.bf16 %v54_v17, %v53_v16  ;;  %v1659_v21 = vpack.c.bf16 %v72_v19, %v71_v18  ;;  %v56_v23 = vld [vmem:[%s2819_s1 + $0x38] sm:$0xff]  ;;  %v73_v24 = vld [vmem:[%s2819_s1 + $0xc0] sm:$0xff]  ;;  %v74_v25 = vld [vmem:[%s2819_s1 + $0xc8] sm:$0xff] }
   0x9   :  { %v48_v26 = vld [vmem:[%s2818_s0 + $0x8] sm:$0xff] }
   0xa   :  { %152 = vmatprep.mubr.f32.mxu0 %v48_v26 }
   0xb   :  { %1654 = vmatpush3.bf16.msra.mxu0 %v1653_v14 }
   0xc   :  { %1656 = vmatprep.subr.bf16.mxu0 %v1655_v15 }
   0xd   :  { %20 = vsyncpa [#allocation4], 0  ;;  %v1661_v27 = vpack.c.bf16 %v56_v23, %v55_v22  ;;  %v1663_v28 = vpack.c.bf16 %v74_v25, %v73_v24  ;;  %v57_v29 = vld [vmem:[%s2819_s1 + $0x40] sm:$0xff]  ;;  %v58_v30 = vld [vmem:[%s2819_s1 + $0x48] sm:$0xff]  ;;  %v1938_v1 = vmov 0.0   ;;  %vm193_vm0 = vcmask 261120  }
   0xe   :  { %v75_v31 = vld [vmem:[%s2819_s1 + $0xd0] sm:$0xff]  ;;  %v76_v32 = vld [vmem:[%s2819_s1 + $0xd8] sm:$0xff]  ;;  %v1665_v33 = vpack.c.bf16 %v58_v30, %v57_v29  ;;  %v77_v37 = vld [vmem:[%s2819_s1 + $0xe0] sm:$0xff]  ;;  %260 = vmatprep.mubr.f32.mxu1 %v1938_v1  ;;  %vm1940_vm1 = vmmov 0   ;;  %vm1062_vm2 = vcmask 1041408   ;;  %vm1379_vm3 = vcmask 41984  }
   0xf   :  { %1658 = vmatpush3.bf16.msra.mxu0 %v1657_v20  ;;  %v1667_v34 = vpack.c.bf16 %v76_v32, %v75_v31  ;;  %v59_v35 = vld [vmem:[%s2819_s1 + $0x50] sm:$0xff]  ;;  %v60_v36 = vld [vmem:[%s2819_s1 + $0x58] sm:$0xff]  ;;  %v78_v38 = vld [vmem:[%s2819_s1 + $0xe8] sm:$0xff] }
  0x10   :  { %1660 = vmatprep.subr.bf16.mxu0 %v1659_v21  ;;  %v1669_v39 = vpack.c.bf16 %v60_v36, %v59_v35  ;;  %v1671_v40 = vpack.c.bf16 %v78_v38, %v77_v37  ;;  %v61_v41 = vld [vmem:[%s2819_s1 + $0x60] sm:$0xff]  ;;  %v62_v42 = vld [vmem:[%s2819_s1 + $0x68] sm:$0xff]  ;;  %v79_v43 = vld [vmem:[%s2819_s1 + $0xf0] sm:$0xff] }
  0x11   :  { %v80_v44 = vld [vmem:[%s2819_s1 + $0xf8] sm:$0xff]  ;;  %v1673_v45 = vpack.c.bf16 %v62_v42, %v61_v41  ;;  %v63_v47 = vld [vmem:[%s2819_s1 + $0x70] sm:$0xff]  ;;  %v47_v50 = vld [vmem:[%s2818_s0] sm:$0xff] }
  0x12   :  { %v1675_v46 = vpack.c.bf16 %v80_v44, %v79_v43  ;;  %v64_v48 = vld [vmem:[%s2819_s1 + $0x78] sm:$0xff]  ;;  %v176_v51 = vld [vmem:[%s2821_s3 + $0x88] sm:$0xff]  ;;  %v175_v54 = vld [vmem:[%s2821_s3 + $0x80] sm:$0xff] }
  0x13   :  { %1662 = vmatpush3.bf16.msra.mxu0 %v1661_v27  ;;  %v1677_v49 = vpack.c.bf16 %v64_v48, %v63_v47  ;;  %v180_v52 = vld [vmem:[%s2821_s3 + $0xa8] sm:$0xff]  ;;  %v179_v55 = vld [vmem:[%s2821_s3 + $0xa0] sm:$0xff]  ;;  %v178_v63 = vld [vmem:[%s2821_s3 + $0x98] sm:$0xff] }
  0x14   :  { %1664 = vmatprep.subr.bf16.mxu0 %v1663_v28  ;;  %v1679_v53 = vpack.c.bf16 %v180_v52, %v176_v51  ;;  %v1681_v56 = vpack.c.bf16 %v179_v55, %v175_v54  ;;  %v184_v57 = vld [vmem:[%s2821_s3 + $0xc8] sm:$0xff]  ;;  %v183_v60 = vld [vmem:[%s2821_s3 + $0xc0] sm:$0xff]  ;;  %v182_v0 = vld [vmem:[%s2821_s3 + $0xb8] sm:$0xff] }
  0x15   :  { %v188_v58 = vld [vmem:[%s2821_s3 + $0xe8] sm:$0xff]  ;;  %v187_v61 = vld [vmem:[%s2821_s3 + $0xe0] sm:$0xff]  ;;  %v1687_v2 = vpack.c.bf16 %v182_v0, %v178_v63  ;;  %v860_v9 = vld [vmem:[%s2823_s5 + $0x90] sm:$0xff] }
  0x16   :  { %1680 = vmatprep.subr.bf16.mxu1 %v1679_v53  ;;  %v1683_v59 = vpack.c.bf16 %v188_v58, %v184_v57  ;;  %v1685_v62 = vpack.c.bf16 %v187_v61, %v183_v60  ;;  %v858_v3 = vld [vmem:[%s2823_s5 + $0x80] sm:$0xff]  ;;  %v859_v4 = vld [vmem:[%s2823_s5 + $0x88] sm:$0xff]  ;;  %v861_v10 = vld [vmem:[%s2823_s5 + $0x98] sm:$0xff] }
  0x17   :  { %1666 = vmatpush3.bf16.msra.mxu0 %v1665_v33  ;;  %1682 = vmatpush1.bf16.msra.mxu1 %v1681_v56  ;;  %v842_v5 = vld [vmem:[%s2823_s5] sm:$0xff]  ;;  %v1743_v6 = vpack.c.bf16 %v859_v4, %v858_v3  ;;  %v843_v7 = vld [vmem:[%s2823_s5 + $0x8] sm:$0xff]  ;;  %v844_v11 = vld [vmem:[%s2823_s5 + $0x10] sm:$0xff]  ;;  %v1747_v13 = vpack.c.bf16 %v861_v10, %v860_v9 }
  0x18   :  { %1668 = vmatprep.subr.bf16.mxu0 %v1667_v34  ;;  %1684 = vmatprep.subr.bf16.mxu1 %v1683_v59  ;;  %v1745_v8 = vpack.c.bf16 %v843_v7, %v842_v5  ;;  %v845_v12 = vld [vmem:[%s2823_s5 + $0x18] sm:$0xff]  ;;  %v862_v15 = vld [vmem:[%s2823_s5 + $0xa0] sm:$0xff]  ;;  %v863_v16 = vld [vmem:[%s2823_s5 + $0xa8] sm:$0xff] }
  0x19   :  { %v1749_v14 = vpack.c.bf16 %v845_v12, %v844_v11  ;;  %v1751_v17 = vpack.c.bf16 %v863_v16, %v862_v15  ;;  %v846_v18 = vld [vmem:[%s2823_s5 + $0x20] sm:$0xff]  ;;  %v847_v19 = vld [vmem:[%s2823_s5 + $0x28] sm:$0xff]  ;;  %v864_v21 = vld [vmem:[%s2823_s5 + $0xb0] sm:$0xff] }
  0x1a   :  { %v1753_v20 = vpack.c.bf16 %v847_v19, %v846_v18  ;;  %v865_v22 = vld [vmem:[%s2823_s5 + $0xb8] sm:$0xff]  ;;  %v848_v23 = vld [vmem:[%s2823_s5 + $0x30] sm:$0xff]  ;;  %v866_v27 = vld [vmem:[%s2823_s5 + $0xc0] sm:$0xff] }
  0x1b   :  { %1670 = vmatpush3.bf16.msra.mxu0 %v1669_v39  ;;  %1686 = vmatpush1.bf16.msra.mxu1 %v1685_v62  ;;  %v1755_v24 = vpack.c.bf16 %v865_v22, %v864_v21  ;;  %v849_v25 = vld [vmem:[%s2823_s5 + $0x38] sm:$0xff]  ;;  %v867_v28 = vld [vmem:[%s2823_s5 + $0xc8] sm:$0xff]  ;;  %v850_v29 = vld [vmem:[%s2823_s5 + $0x40] sm:$0xff] }
  0x1c   :  { %1672 = vmatprep.subr.bf16.mxu0 %v1671_v40  ;;  %1688 = vmatprep.subr.bf16.mxu1 %v1687_v2  ;;  %v1757_v26 = vpack.c.bf16 %v849_v25, %v848_v23  ;;  %v1759_v30 = vpack.c.bf16 %v867_v28, %v866_v27  ;;  %v851_v31 = vld [vmem:[%s2823_s5 + $0x48] sm:$0xff]  ;;  %v868_v33 = vld [vmem:[%s2823_s5 + $0xd0] sm:$0xff]  ;;  %v869_v34 = vld [vmem:[%s2823_s5 + $0xd8] sm:$0xff] }
  0x1d   :  { %v1761_v32 = vpack.c.bf16 %v851_v31, %v850_v29  ;;  %v852_v35 = vld [vmem:[%s2823_s5 + $0x50] sm:$0xff]  ;;  %v1763_v36 = vpack.c.bf16 %v869_v34, %v868_v33  ;;  %v853_v37 = vld [vmem:[%s2823_s5 + $0x58] sm:$0xff]  ;;  %v870_v39 = vld [vmem:[%s2823_s5 + $0xe0] sm:$0xff] }
  0x1e   :  { %v1765_v38 = vpack.c.bf16 %v853_v37, %v852_v35  ;;  %v871_v40 = vld [vmem:[%s2823_s5 + $0xe8] sm:$0xff]  ;;  %v854_v41 = vld [vmem:[%s2823_s5 + $0x60] sm:$0xff]  ;;  %v181_v51 = vld [vmem:[%s2821_s3 + $0xb0] sm:$0xff] }
  0x1f   :  { %1674 = vmatpush3.bf16.msra.mxu0 %v1673_v45  ;;  %v1767_v42 = vpack.c.bf16 %v871_v40, %v870_v39  ;;  %v855_v43 = vld [vmem:[%s2823_s5 + $0x68] sm:$0xff]  ;;  %v186_v52 = vld [vmem:[%s2821_s3 + $0xd8] sm:$0xff]  ;;  %v185_v58 = vld [vmem:[%s2821_s3 + $0xd0] sm:$0xff] }
  0x20   :  { %1676 = vmatprep.subr.bf16.mxu0 %v1675_v46  ;;  %v1769_v44 = vpack.c.bf16 %v855_v43, %v854_v41  ;;  %v1406_v46 = vld [vmem:[%s2820_s2] ss:$0 sm:$0xff]  ;;  %v190_v53 = vld [vmem:[%s2821_s3 + $0xf8] sm:$0xff]  ;;  %v189_v59 = vld [vmem:[%s2821_s3 + $0xf0] sm:$0xff] }
  0x21   :  { %v1691_v57 = vpack.c.bf16 %v190_v53, %v186_v52  ;;  %v160_v60 = vld [vmem:[%s2821_s3 + $0x8] sm:$0xff]  ;;  %v1693_v62 = vpack.c.bf16 %v189_v59, %v185_v58  ;;  %v159_v0 = vld [vmem:[%s2821_s3] sm:$0xff]  ;;  %v162_v9 = vld [vmem:[%s2821_s3 + $0x18] sm:$0xff] }
  0x22   :  { %v164_v61 = vld [vmem:[%s2821_s3 + $0x28] sm:$0xff]  ;;  %v163_v2 = vld [vmem:[%s2821_s3 + $0x20] sm:$0xff]  ;;  %v166_v10 = vld [vmem:[%s2821_s3 + $0x38] sm:$0xff] }
  0x23   :  { %1678 = vmatpush3.bf16.msra.mxu0 %v1677_v49  ;;  %v1695_v63 = vpack.c.bf16 %v164_v61, %v160_v60  ;;  %v168_v3 = vld [vmem:[%s2821_s3 + $0x48] sm:$0xff]  ;;  %v1697_v5 = vpack.c.bf16 %v163_v2, %v159_v0  ;;  %v167_v7 = vld [vmem:[%s2821_s3 + $0x40] sm:$0xff]  ;;  %v1703_v12 = vpack.c.bf16 %v166_v10, %v162_v9  ;;  %v170_v15 = vld [vmem:[%s2821_s3 + $0x58] sm:$0xff] }
  0x24   :  { %1744 = vmatprep.subr.bf16.mxu0 %v1743_v6  ;;  %v172_v4 = vld [vmem:[%s2821_s3 + $0x68] sm:$0xff]  ;;  %v174_v16 = vld [vmem:[%s2821_s3 + $0x78] sm:$0xff]  ;;  %v169_v19 = vld [vmem:[%s2821_s3 + $0x50] sm:$0xff] }
  0x25   :  { %v1699_v6 = vpack.c.bf16 %v172_v4, %v168_v3  ;;  %v1707_v18 = vpack.c.bf16 %v174_v16, %v170_v15  ;;  %v483_v21 = vld [vmem:[%s2821_s3 + $0x108] sm:$0xff]  ;;  %v482_v25 = vld [vmem:[%s2821_s3 + $0x100] sm:$0xff]  ;;  %v485_v33 = vld [vmem:[%s2821_s3 + $0x118] sm:$0xff] }
  0x26   :  { %153 = vmatmul.mubr.f32.vlgmr.msra.gmra.mrb[0].mxu0 %v47_v50  ;;  %v177_v50 = vld [vmem:[%s2821_s3 + $0x90] sm:$0xff]  ;;  %v487_v22 = vld [vmem:[%s2821_s3 + $0x128] sm:$0xff]  ;;  %v490_v31 = vld [vmem:[%s2821_s3 + $0x140] sm:$0xff] }
  0x27   :  { %1746 = vmatpush3.bf16.msra.mxu0 %v1745_v8  ;;  %v1689_v55 = vpack.c.bf16 %v181_v51, %v177_v50  ;;  %v171_v8 = vld [vmem:[%s2821_s3 + $0x60] sm:$0xff]  ;;  %v491_v27 = vld [vmem:[%s2821_s3 + $0x148] sm:$0xff]  ;;  %v489_v34 = vld [vmem:[%s2821_s3 + $0x138] sm:$0xff] }
  0x28   :  { %1748 = vmatprep.subr.bf16.mxu0 %v1747_v13  ;;  %v1701_v11 = vpack.c.bf16 %v171_v8, %v167_v7  ;;  %v161_v13 = vld [vmem:[%s2821_s3 + $0x10] sm:$0xff]  ;;  %v495_v28 = vld [vmem:[%s2821_s3 + $0x168] sm:$0xff]  ;;  %v493_v39 = vld [vmem:[%s2821_s3 + $0x158] sm:$0xff] }
  0x29   :  { %v484_v37 = vld [vmem:[%s2821_s3 + $0x110] sm:$0xff]  ;;  %v497_v40 = vld [vmem:[%s2821_s3 + $0x178] sm:$0xff]  ;;  %v647_v50 = vld [vmem:[%s2821_s3 + $0x180] sm:$0xff] }
  0x2a   :  { %v1723_v43 = vpack.c.bf16 %v497_v40, %v493_v39  ;;  %v651_v51 = vld [vmem:[%s2821_s3 + $0x1a0] sm:$0xff]  ;;  %v656_v52 = vld [vmem:[%s2821_s3 + $0x1c8] sm:$0xff]  ;;  %v650_v59 = vld [vmem:[%s2821_s3 + $0x198] sm:$0xff] }
  0x2b   :  { %1750 = vmatpush3.bf16.msra.mxu0 %v1749_v14  ;;  %v165_v14 = vld [vmem:[%s2821_s3 + $0x30] sm:$0xff]  ;;  %v660_v53 = vld [vmem:[%s2821_s3 + $0x1e8] sm:$0xff]  ;;  %v659_v58 = vld [vmem:[%s2821_s3 + $0x1e0] sm:$0xff] }
  0x2c   :  { %1752 = vmatprep.subr.bf16.mxu0 %v1751_v17  ;;  %v1705_v17 = vpack.c.bf16 %v165_v14, %v161_v13  ;;  %v654_v60 = vld [vmem:[%s2821_s3 + $0x1b8] sm:$0xff]  ;;  %v653_v0 = vld [vmem:[%s2821_s3 + $0x1b0] sm:$0xff]  ;;  %v1090_v9 = vld [vmem:[%s2827_s9 + $0x80] sm:$0xff] }
  0x2d   :  { %v658_v2 = vld [vmem:[%s2821_s3 + $0x1d8] sm:$0xff]  ;;  %v657_v7 = vld [vmem:[%s2821_s3 + $0x1d0] sm:$0xff]  ;;  %v1091_v10 = vld [vmem:[%s2827_s9 + $0x88] sm:$0xff] }
  0x2e   :  { %v662_v3 = vld [vmem:[%s2821_s3 + $0x1f8] sm:$0xff]  ;;  %v661_v8 = vld [vmem:[%s2821_s3 + $0x1f0] sm:$0xff]  ;;  %v1075_v13 = vld [vmem:[%s2827_s9 + $0x8] sm:$0xff] }
  0x2f   :  { %1754 = vmatpush3.bf16.msra.mxu0 %v1753_v20  ;;  %v173_v20 = vld [vmem:[%s2821_s3 + $0x70] sm:$0xff]  ;;  %v1093_v15 = vld [vmem:[%s2827_s9 + $0x98] sm:$0xff] }
  0x30   :  { %1756 = vmatprep.subr.bf16.mxu0 %v1755_v24  ;;  %v1709_v23 = vpack.c.bf16 %v173_v20, %v169_v19  ;;  %v1711_v24 = vpack.c.bf16 %v487_v22, %v483_v21  ;;  %v1092_v14 = vld [vmem:[%s2827_s9 + $0x90] sm:$0xff]  ;;  %v1077_v19 = vld [vmem:[%s2827_s9 + $0x18] sm:$0xff]  ;;  %v1094_v20 = vld [vmem:[%s2827_s9 + $0xa0] sm:$0xff] }
  0x31   :  { %v1095_v21 = vld [vmem:[%s2827_s9 + $0xa8] sm:$0xff]  ;;  %v1101_v39 = vld [vmem:[%s2827_s9 + $0xd8] sm:$0xff] }
  0x33   :  { %1758 = vmatpush3.bf16.msra.mxu0 %v1757_v26  ;;  %v486_v26 = vld [vmem:[%s2821_s3 + $0x120] sm:$0xff] }
  0x34   :  { %1760 = vmatprep.subr.bf16.mxu0 %v1759_v30  ;;  %v1713_v29 = vpack.c.bf16 %v486_v26, %v482_v25  ;;  %v1715_v30 = vpack.c.bf16 %v495_v28, %v491_v27  ;;  %v1079_v25 = vld [vmem:[%s2827_s9 + $0x28] sm:$0xff]  ;;  %v1096_v26 = vld [vmem:[%s2827_s9 + $0xb0] sm:$0xff]  ;;  %v1097_v27 = vld [vmem:[%s2827_s9 + $0xb8] sm:$0xff] }
  0x37   :  { %1762 = vmatpush3.bf16.msra.mxu0 %v1761_v32  ;;  %v494_v32 = vld [vmem:[%s2821_s3 + $0x160] sm:$0xff] }
  0x38   :  { %1764 = vmatprep.subr.bf16.mxu0 %v1763_v36  ;;  %v1717_v35 = vpack.c.bf16 %v494_v32, %v490_v31  ;;  %v1719_v36 = vpack.c.bf16 %v489_v34, %v485_v33  ;;  %v1081_v31 = vld [vmem:[%s2827_s9 + $0x38] sm:$0xff]  ;;  %v1098_v32 = vld [vmem:[%s2827_s9 + $0xc0] sm:$0xff]  ;;  %v1099_v33 = vld [vmem:[%s2827_s9 + $0xc8] sm:$0xff] }
  0x3b   :  { %1766 = vmatpush3.bf16.msra.mxu0 %v1765_v38  ;;  %v488_v38 = vld [vmem:[%s2821_s3 + $0x130] sm:$0xff] }
  0x3c   :  { %1768 = vmatprep.subr.bf16.mxu0 %v1767_v42  ;;  %v1721_v41 = vpack.c.bf16 %v488_v38, %v484_v37  ;;  %v1083_v37 = vld [vmem:[%s2827_s9 + $0x48] sm:$0xff]  ;;  %v1100_v38 = vld [vmem:[%s2827_s9 + $0xd0] sm:$0xff] }
  0x3f   :  { %1770 = vmatpush3.bf16.msra.mxu0 %v1769_v44  ;;  %v492_v44 = vld [vmem:[%s2821_s3 + $0x150] sm:$0xff] }
  0xf9   :  { %v1452_v45 = vpop.f32.mrb[0].mxu0 }
  0xfa   :  { %v1453_v47 = vpop.f32.mrb[1].mxu0 }
  0xfb   :  { %v1454_v48 = vadd.f32 %v1453_v47, %v1452_v45  ;;  %v496_v45 = vld [vmem:[%s2821_s3 + $0x170] sm:$0xff]  ;;  %v652_v47 = vld [vmem:[%s2821_s3 + $0x1a8] sm:$0xff] }
  0xfd   :  { %v155_v49 = vadd.f32 %v1454_v48, %v1406_v46  ;;  %v648_v46 = vld [vmem:[%s2821_s3 + $0x188] sm:$0xff]  ;;  %v1725_v48 = vpack.c.bf16 %v496_v45, %v492_v44  ;;  %v1102_v44 = vld [vmem:[%s2827_s9 + $0xe0] sm:$0xff] }
  0xfe   :  { %v1103_v45 = vld [vmem:[%s2827_s9 + $0xe8] sm:$0xff] }
  0xff   :  { %v2248_v54 = vmax.f32 %v155_v49, 0.0  ;;  %v1727_v49 = vpack.c.bf16 %v652_v47, %v648_v46  ;;  %v1831_v47 = vpack.c.bf16 %v1103_v45, %v1102_v44 }
 0x101   :  { %v192_v56 = vrot.slane %v2248_v54, 2  ;;  %v498_v42 = vrot.slane %v2248_v54, 4 }
 0x103   :  { %1407 = vmatmul.mubr.msk.f32.vlgmr.msra.gmra.mrb[0].mxu1 %vm193_vm0, %v192_v56 }
 0x104   :  { %1690 = vmatpush1.bf16.msra.mxu1 %v1689_v55  ;;  %331 = vmatprep.mubr.f32.mxu1 %v1938_v1  ;;  %v1729_v55 = vpack.c.bf16 %v651_v51, %v647_v50  ;;  %v872_v51 = vld [vmem:[%s2823_s5 + $0xf0] sm:$0xff] }
 0x105   :  { %1692 = vmatprep.subr.bf16.mxu1 %v1691_v57  ;;  %v655_v57 = vld [vmem:[%s2821_s3 + $0x1c0] sm:$0xff] }
 0x106   :  { %v1733_v61 = vpack.c.bf16 %v659_v58, %v655_v57  ;;  %v1104_v57 = vld [vmem:[%s2827_s9 + $0xf0] sm:$0xff] }
 0x108   :  { %1694 = vmatpush1.bf16.msra.mxu1 %v1693_v62  ;;  %v1735_v62 = vpack.c.bf16 %v654_v60, %v650_v59  ;;  %v1105_v59 = vld [vmem:[%s2827_s9 + $0xf8] sm:$0xff]  ;;  %v1088_v60 = vld [vmem:[%s2827_s9 + $0x70] sm:$0xff] }
 0x109   :  { %1696 = vmatprep.subr.bf16.mxu1 %v1695_v63  ;;  %v649_v63 = vld [vmem:[%s2821_s3 + $0x190] sm:$0xff] }
 0x10a   :  { %v1737_v4 = vpack.c.bf16 %v653_v0, %v649_v63  ;;  %v890_v0 = vld [vmem:[%s2823_s5 + $0x180] sm:$0xff] }
 0x10b   :  { %1408 = vmatmul.mubr.msk.f32.vlgmr.msra.gmra.mrb[2].mxu1 %vm193_vm0, %v192_v56  ;;  %v1731_v56 = vpack.c.bf16 %v660_v53, %v656_v52  ;;  %v873_v52 = vld [vmem:[%s2823_s5 + $0xf8] sm:$0xff] }
 0x10c   :  { %1698 = vmatpush1.bf16.msra.mxu1 %v1697_v5  ;;  %404 = vmatprep.mubr.f32.mxu1 %v1938_v1  ;;  %v663_v5 = vrot.slane %v2248_v54, 6  ;;  %v1771_v53 = vpack.c.bf16 %v873_v52, %v872_v51  ;;  %v884_v52 = vld [vmem:[%s2823_s5 + $0x150] sm:$0xff] }
 0x10d   :  { %1700 = vmatprep.subr.bf16.mxu1 %v1699_v6  ;;  %v1739_v6 = vpack.c.bf16 %v662_v3, %v658_v2  ;;  %v891_v2 = vld [vmem:[%s2823_s5 + $0x188] sm:$0xff] }
 0x10e   :  { %1772 = vmatprep.subr.bf16.mxu0 %v1771_v53  ;;  %v1775_v3 = vpack.c.bf16 %v891_v2, %v890_v0  ;;  %v885_v53 = vld [vmem:[%s2823_s5 + $0x158] sm:$0xff] }
 0x110   :  { %1702 = vmatpush1.bf16.msra.mxu1 %v1701_v11  ;;  %v1807_v11 = vpack.c.bf16 %v1091_v10, %v1090_v9 }
 0x111   :  { %1704 = vmatprep.subr.bf16.mxu1 %v1703_v12  ;;  %v1074_v12 = vld [vmem:[%s2827_s9] sm:$0xff] }
 0x112   :  { %v1809_v16 = vpack.c.bf16 %v1075_v13, %v1074_v12  ;;  %v874_v13 = vld [vmem:[%s2823_s5 + $0x100] sm:$0xff] }
 0x113   :  { %1409 = vmatmul.mubr.msk.f32.vlgmr.msra.gmra.mrb[0].mxu1 %vm193_vm0, %v2248_v54 }
 0x114   :  { %1706 = vmatpush1.bf16.msra.mxu1 %v1705_v17  ;;  %475 = vmatprep.mubr.f32.mxu1 %v1938_v1  ;;  %v1811_v17 = vpack.c.bf16 %v1093_v15, %v1092_v14  ;;  %v875_v14 = vld [vmem:[%s2823_s5 + $0x108] sm:$0xff] }
 0x115   :  { %1708 = vmatprep.subr.bf16.mxu1 %v1707_v18  ;;  %v1076_v18 = vld [vmem:[%s2827_s9 + $0x10] sm:$0xff] }
 0x116   :  { %v1813_v22 = vpack.c.bf16 %v1077_v19, %v1076_v18  ;;  %v893_v18 = vld [vmem:[%s2823_s5 + $0x198] sm:$0xff] }
 0x118   :  { %1710 = vmatpush1.bf16.msra.mxu1 %v1709_v23  ;;  %v1815_v23 = vpack.c.bf16 %v1095_v21, %v1094_v20  ;;  %v1777_v20 = vpack.c.bf16 %v875_v14, %v874_v13  ;;  %v1125_v13 = vld [vmem:[%s2827_s9 + $0x198] sm:$0xff] }
 0x119   :  { %1712 = vmatprep.subr.bf16.mxu1 %v1711_v24  ;;  %v1078_v24 = vld [vmem:[%s2827_s9 + $0x20] sm:$0xff] }
 0x11a   :  { %v1817_v28 = vpack.c.bf16 %v1079_v25, %v1078_v24  ;;  %v877_v24 = vld [vmem:[%s2823_s5 + $0x118] sm:$0xff] }
 0x11b   :  { %1410 = vmatmul.mubr.msk.f32.vlgmr.msra.gmra.mrb[2].mxu1 %vm193_vm0, %v2248_v54  ;;  %v1741_v54 = vpack.c.bf16 %v661_v8, %v657_v7  ;;  %v2540_v7 = vld [vmem:[%s2822_s4] sm:$0xf] }
 0x11c   :  { %1714 = vmatpush1.bf16.msra.mxu1 %v1713_v29  ;;  %565 = vmatprep.mubr.f32.mxu1 %v1938_v1  ;;  %v1819_v29 = vpack.c.bf16 %v1097_v27, %v1096_v26  ;;  %v894_v26 = vld [vmem:[%s2823_s5 + $0x1a0] sm:$0xff]  ;;  %v895_v27 = vld [vmem:[%s2823_s5 + $0x1a8] sm:$0xff] }
 0x11d   :  { %1716 = vmatprep.subr.bf16.mxu1 %v1715_v30  ;;  %v1080_v30 = vld [vmem:[%s2827_s9 + $0x30] sm:$0xff] }
 0x11e   :  { %v1821_v34 = vpack.c.bf16 %v1081_v31, %v1080_v30  ;;  %v1783_v31 = vpack.c.bf16 %v895_v27, %v894_v26  ;;  %v1129_v26 = vld [vmem:[%s2827_s9 + $0x1b8] sm:$0xff] }
 0x120   :  { %1718 = vmatpush1.bf16.msra.mxu1 %v1717_v35  ;;  %v1823_v35 = vpack.c.bf16 %v1099_v33, %v1098_v32  ;;  %v878_v32 = vld [vmem:[%s2823_s5 + $0x120] sm:$0xff]  ;;  %v879_v33 = vld [vmem:[%s2823_s5 + $0x128] sm:$0xff] }
 0x121   :  { %1720 = vmatprep.subr.bf16.mxu1 %v1719_v36  ;;  %v1082_v36 = vld [vmem:[%s2827_s9 + $0x40] sm:$0xff] }
 0x122   :  { %v1825_v40 = vpack.c.bf16 %v1083_v37, %v1082_v36  ;;  %v897_v36 = vld [vmem:[%s2823_s5 + $0x1b8] sm:$0xff] }
 0x123   :  { %1411 = vmatmul.mubr.msk.f32.vlgmr.msra.gmra.mrb[0].mxu1 %vm193_vm0, %v498_v42 }
 0x124   :  { %1722 = vmatpush1.bf16.msra.mxu1 %v1721_v41  ;;  %636 = vmatprep.mubr.f32.mxu1 %v1938_v1  ;;  %v1827_v41 = vpack.c.bf16 %v1101_v39, %v1100_v38  ;;  %v1785_v38 = vpack.c.bf16 %v879_v33, %v878_v32  ;;  %v1131_v32 = vld [vmem:[%s2827_s9 + $0x1c8] sm:$0xff] }
 0x125   :  { %1724 = vmatprep.subr.bf16.mxu1 %v1723_v43  ;;  %v1085_v43 = vld [vmem:[%s2827_s9 + $0x58] sm:$0xff] }
 0x128   :  { %1726 = vmatpush1.bf16.msra.mxu1 %v1725_v48  ;;  %v1086_v48 = vld [vmem:[%s2827_s9 + $0x60] sm:$0xff] }
 0x129   :  { %1728 = vmatprep.subr.bf16.mxu1 %v1727_v49  ;;  %v1087_v49 = vld [vmem:[%s2827_s9 + $0x68] sm:$0xff] }
 0x12a   :  { %v1833_v50 = vpack.c.bf16 %v1087_v49, %v1086_v48  ;;  %v900_v48 = vld [vmem:[%s2823_s5 + $0x1d0] sm:$0xff]  ;;  %v901_v49 = vld [vmem:[%s2823_s5 + $0x1d8] sm:$0xff] }
 0x12b   :  { %1412 = vmatmul.mubr.msk.f32.vlgmr.msra.gmra.mrb[2].mxu1 %vm193_vm0, %v498_v42  ;;  %v1084_v42 = vld [vmem:[%s2827_s9 + $0x50] sm:$0xff]  ;;  %v1795_v51 = vpack.c.bf16 %v901_v49, %v900_v48  ;;  %v1119_v48 = vld [vmem:[%s2827_s9 + $0x168] sm:$0xff] }
 0x12c   :  { %1730 = vmatpush1.bf16.msra.mxu1 %v1729_v55  ;;  %730 = vmatprep.mubr.f32.mxu1 %v1938_v1  ;;  %v1829_v46 = vpack.c.bf16 %v1085_v43, %v1084_v42  ;;  %v856_v55 = vld [vmem:[%s2823_s5 + $0x70] sm:$0xff]  ;;  %v898_v42 = vld [vmem:[%s2823_s5 + $0x1c0] sm:$0xff]  ;;  %v899_v43 = vld [vmem:[%s2823_s5 + $0x1c8] sm:$0xff] }
 0x12d   :  { %1732 = vmatprep.subr.bf16.mxu1 %v1731_v56  ;;  %v857_v56 = vld [vmem:[%s2823_s5 + $0x78] sm:$0xff]  ;;  %v1791_v45 = vpack.c.bf16 %v899_v43, %v898_v42  ;;  %v1134_v43 = vld [vmem:[%s2827_s9 + $0x1e0] sm:$0xff]  ;;  %v1136_v49 = vld [vmem:[%s2827_s9 + $0x1f0] sm:$0xff] }
 0x12e   :  { %v1773_v58 = vpack.c.bf16 %v857_v56, %v856_v55  ;;  %v902_v55 = vld [vmem:[%s2823_s5 + $0x1e0] sm:$0xff]  ;;  %v903_v56 = vld [vmem:[%s2823_s5 + $0x1e8] sm:$0xff]  ;;  %v1117_v42 = vld [vmem:[%s2827_s9 + $0x158] sm:$0xff] }
 0x130   :  { %1734 = vmatpush1.bf16.msra.mxu1 %v1733_v61  ;;  %v1089_v61 = vld [vmem:[%s2827_s9 + $0x78] sm:$0xff]  ;;  %1774 = vmatpush3.bf16.msra.mxu0 %v1773_v58 }
 0x131   :  { %1736 = vmatprep.subr.bf16.mxu1 %v1735_v62  ;;  %v1835_v62 = vpack.c.bf16 %v1105_v59, %v1104_v57  ;;  %v1837_v63 = vpack.c.bf16 %v1089_v61, %v1088_v60  ;;  %1776 = vmatprep.subr.bf16.mxu0 %v1775_v3  ;;  %v1797_v57 = vpack.c.bf16 %v885_v53, %v884_v52  ;;  %v886_v60 = vld [vmem:[%s2823_s5 + $0x160] sm:$0xff]  ;;  %v887_v61 = vld [vmem:[%s2823_s5 + $0x168] sm:$0xff]  ;;  %v1120_v53 = vld [vmem:[%s2827_s9 + $0x170] sm:$0xff] }
 0x132   :  { %v1799_v59 = vpack.c.bf16 %v903_v56, %v902_v55  ;;  %v1801_v0 = vpack.c.bf16 %v887_v61, %v886_v60  ;;  %v1121_v55 = vld [vmem:[%s2827_s9 + $0x178] sm:$0xff]  ;;  %v1288_v61 = vld [vmem:[%s2829_s11 + $0x10] sm:$0xff] }
 0x133   :  { %1413 = vmatmul.mubr.msk.f32.vlgmr.msra.gmra.mrb[0].mxu1 %vm193_vm0, %v663_v5  ;;  %v1869_v56 = vpack.c.bf16 %v1121_v55, %v1120_v53 }
 0x134   :  { %1738 = vmatpush1.bf16.msra.mxu1 %v1737_v4  ;;  %801 = vmatprep.mubr.f32.mxu1 %v1938_v1  ;;  %v814_v4 = vlaneseq }
 0x135   :  { %1740 = vmatprep.subr.bf16.mxu1 %v1739_v6 }
 0x138   :  { %1742 = vmatpush1.bf16.msra.mxu1 %v1741_v54 }
 0x139   :  { %1808 = vmatprep.subr.bf16.mxu1 %v1807_v11 }
 0x13b   :  { %1414 = vmatmul.mubr.msk.f32.vlgmr.msra.gmra.mrb[2].mxu1 %vm193_vm0, %v663_v5  ;;  %v2534_v5 = vshrl.u32 %v814_v4, 7  ;;  %v888_v4 = vld [vmem:[%s2823_s5 + $0x170] sm:$0xff] }
 0x13c   :  { %1810 = vmatpush3.bf16.msra.mxu1 %v1809_v16 }
 0x13d   :  { %1812 = vmatprep.subr.bf16.mxu1 %v1811_v17  ;;  %v816_v6 = vsub.s32 0, %v2534_v5  ;;  %v820_v8 = vsub.s32 1, %v2534_v5  ;;  %v828_v16 = vsub.s32 3, %v2534_v5  ;;  %v892_v17 = vld [vmem:[%s2823_s5 + $0x190] sm:$0xff]  ;;  %v824_v58 = vsub.s32 2, %v2534_v5  ;;  %v889_v5 = vld [vmem:[%s2823_s5 + $0x178] sm:$0xff] }
 0x13f   :  { %v817_v9 = vrot.slane %v2540_v7, %v816_v6  ;;  %v821_v10 = vrot.slane %v2540_v7, %v820_v8  ;;  %v829_v25 = vrot.slane %v2540_v7, %v828_v16  ;;  %v825_v2 = vrot.slane %v2540_v7, %v824_v58  ;;  %v1122_v6 = vld [vmem:[%s2827_s9 + $0x180] sm:$0xff]  ;;  %v1123_v8 = vld [vmem:[%s2827_s9 + $0x188] sm:$0xff] }
 0x140   :  { %1814 = vmatpush3.bf16.msra.mxu1 %v1813_v22  ;;  %v1779_v22 = vpack.c.bf16 %v893_v18, %v892_v17  ;;  %v1805_v7 = vpack.c.bf16 %v889_v5, %v888_v4  ;;  %v1108_v17 = vld [vmem:[%s2827_s9 + $0x110] sm:$0xff]  ;;  %v1109_v18 = vld [vmem:[%s2827_s9 + $0x118] sm:$0xff]  ;;  %v1287_v58 = vld [vmem:[%s2829_s11 + $0x8] sm:$0xff] }
 0x141   :  { %1816 = vmatprep.subr.bf16.mxu1 %v1815_v23  ;;  %v876_v23 = vld [vmem:[%s2823_s5 + $0x110] sm:$0xff]  ;;  %v1293_v5 = vld [vmem:[%s2829_s11 + $0x38] sm:$0xff] }
 0x142   :  { %v1292_v4 = vld [vmem:[%s2829_s11 + $0x30] sm:$0xff] }
 0x144   :  { %1818 = vmatpush3.bf16.msra.mxu1 %v1817_v28 }
 0x145   :  { %1820 = vmatprep.subr.bf16.mxu1 %v1819_v29  ;;  %v1781_v29 = vpack.c.bf16 %v877_v24, %v876_v23  ;;  %v1110_v23 = vld [vmem:[%s2827_s9 + $0x120] sm:$0xff]  ;;  %v1111_v24 = vld [vmem:[%s2827_s9 + $0x128] sm:$0xff] }
 0x146   :  { %v1849_v27 = vpack.c.bf16 %v1111_v24, %v1110_v23  ;;  %v1415_v24 = vld [vmem:[%s2824_s6] ss:$0 sm:$0xff] }
 0x148   :  { %1822 = vmatpush3.bf16.msra.mxu1 %v1821_v34 }
 0x149   :  { %1824 = vmatprep.subr.bf16.mxu1 %v1823_v35  ;;  %v896_v35 = vld [vmem:[%s2823_s5 + $0x1b0] sm:$0xff] }
 0x14a   :  { %v1787_v39 = vpack.c.bf16 %v897_v36, %v896_v35  ;;  %v1114_v35 = vld [vmem:[%s2827_s9 + $0x140] sm:$0xff]  ;;  %v1115_v36 = vld [vmem:[%s2827_s9 + $0x148] sm:$0xff] }
 0x14c   :  { %1826 = vmatpush3.bf16.msra.mxu1 %v1825_v40  ;;  %v880_v40 = vld [vmem:[%s2823_s5 + $0x130] sm:$0xff] }
 0x14d   :  { %1828 = vmatprep.subr.bf16.mxu1 %v1827_v41  ;;  %v881_v41 = vld [vmem:[%s2823_s5 + $0x138] sm:$0xff] }
 0x14e   :  { %v1789_v44 = vpack.c.bf16 %v881_v41, %v880_v40  ;;  %v1116_v41 = vld [vmem:[%s2827_s9 + $0x150] sm:$0xff] }
 0x150   :  { %1830 = vmatpush3.bf16.msra.mxu1 %v1829_v46  ;;  %v882_v46 = vld [vmem:[%s2823_s5 + $0x140] sm:$0xff] }
 0x151   :  { %1832 = vmatprep.subr.bf16.mxu1 %v1831_v47  ;;  %v883_v47 = vld [vmem:[%s2823_s5 + $0x148] sm:$0xff] }
 0x154   :  { %1834 = vmatpush3.bf16.msra.mxu1 %v1833_v50  ;;  %v1793_v50 = vpack.c.bf16 %v883_v47, %v882_v46  ;;  %v1118_v47 = vld [vmem:[%s2827_s9 + $0x160] sm:$0xff] }
 0x155   :  { %1836 = vmatprep.subr.bf16.mxu1 %v1835_v62  ;;  %v904_v62 = vld [vmem:[%s2823_s5 + $0x1f0] sm:$0xff] }
 0x158   :  { %1838 = vmatpush3.bf16.msra.mxu1 %v1837_v63  ;;  %v905_v63 = vld [vmem:[%s2823_s5 + $0x1f8] sm:$0xff] }
 0x159   :  { %v1803_v3 = vpack.c.bf16 %v905_v63, %v904_v62  ;;  %v1289_v62 = vld [vmem:[%s2829_s11 + $0x18] sm:$0xff] }
 0x15a   :  { %v1875_v63 = vpack.c.bf16 %v1289_v62, %v1288_v61 }
 0x206   :  { %v732_v54 = vpop.f32.mrb[0].mxu1 }
 0x207   :  { %v834_v11 = vadd.f32 %v817_v9, %v732_v54  ;;  %v734_v12 = vpop.f32.mrb[1].mxu1  ;;  %v1106_v54 = vld [vmem:[%s2827_s9 + $0x100] sm:$0xff] }
 0x208   :  { %v835_v15 = vadd.f32 %v821_v10, %v734_v12  ;;  %v1839_v10 = vpack.c.bf16 %v1123_v8, %v1122_v6  ;;  %v1124_v12 = vld [vmem:[%s2827_s9 + $0x190] sm:$0xff]  ;;  %v1881_v6 = vpack.c.bf16 %v1293_v5, %v1292_v4  ;;  %v1294_v8 = vld [vmem:[%s2829_s11 + $0x40] sm:$0xff] }
 0x209   :  { %v838_v21 = vmax.f32 %v834_v11, 0.0  ;;  %v1107_v11 = vld [vmem:[%s2827_s9 + $0x108] sm:$0xff]  ;;  %v1843_v16 = vpack.c.bf16 %v1125_v13, %v1124_v12  ;;  %v1298_v12 = vld [vmem:[%s2829_s11 + $0x60] sm:$0xff] }
 0x20a   :  { %v839_v19 = vmax.f32 %v835_v15, 0.0  ;;  %v1841_v14 = vpack.c.bf16 %v1107_v11, %v1106_v54  ;;  %v1297_v54 = vld [vmem:[%s2829_s11 + $0x58] sm:$0xff]  ;;  %v1299_v13 = vld [vmem:[%s2829_s11 + $0x68] sm:$0xff] }
 0x20c   :  { %977 = vmatprep.mubr.f32.mxu0 %v839_v19  ;;  %1209 = vmatprep.mubr.f32.mxu1 %v839_v19  ;;  %v1126_v19 = vld [vmem:[%s2827_s9 + $0x1a0] sm:$0xff] }
 0x20d   :  { %978 = vmatmul.mubr.f32.vlgmr.msra.gmra.mrb[2].mxu0 %v838_v21  ;;  %1210 = vmatmul.mubr.f32.vlgmr.msra.gmra.mrb[4].mxu1 %v838_v21  ;;  %v1845_v21 = vpack.c.bf16 %v1109_v18, %v1108_v17 }
 0x20e   :  { %1778 = vmatpush3.bf16.msra.mxu0 %v1777_v20  ;;  %v803_v28 = vpop.f32.mrb[2].mxu1  ;;  %v1127_v20 = vld [vmem:[%s2827_s9 + $0x1a8] sm:$0xff]  ;;  %1644 = vmatprep.mubr.msk.f32.mxu1 %vm1940_vm1, %v1938_v1 }
 0x20f   :  { %v805_v30 = vpop.f32.mrb[3].mxu1  ;;  %1780 = vmatprep.subr.bf16.mxu0 %v1779_v22  ;;  %v2650_v9 = vadd.f32 %v825_v2, %v803_v28  ;;  %v1847_v22 = vpack.c.bf16 %v1127_v20, %v1126_v19  ;;  %v1291_v2 = vld [vmem:[%s2829_s11 + $0x28] sm:$0xff] }
 0x210   :  { %v2577_v34 = vadd.f32 %v829_v25, %v805_v30  ;;  %v1128_v25 = vld [vmem:[%s2827_s9 + $0x1b0] sm:$0xff]  ;;  %v1113_v30 = vld [vmem:[%s2827_s9 + $0x138] sm:$0xff] }
 0x211   :  { %v840_v15 = vmax.f32 %v2650_v9, 0.0  ;;  %v1851_v28 = vpack.c.bf16 %v1129_v26, %v1128_v25 }
 0x212   :  { %v841_v37 = vmax.f32 %v2577_v34, 0.0  ;;  %1782 = vmatpush3.bf16.msra.mxu0 %v1781_v29  ;;  %v1112_v29 = vld [vmem:[%s2827_s9 + $0x130] sm:$0xff] }
 0x213   :  { %1784 = vmatprep.subr.bf16.mxu0 %v1783_v31  ;;  %v1130_v31 = vld [vmem:[%s2827_s9 + $0x1c0] sm:$0xff]  ;;  %v1853_v33 = vpack.c.bf16 %v1113_v30, %v1112_v29 }
 0x214   :  { %1047 = vmatprep.mubr.f32.mxu0 %v841_v37  ;;  %v1855_v34 = vpack.c.bf16 %v1131_v32, %v1130_v31  ;;  %v1416_v30 = vld [vmem:[%s2825_s7] ss:$0 sm:$0xff] }
 0x216   :  { %1786 = vmatpush3.bf16.msra.mxu0 %v1785_v38  ;;  %v1133_v38 = vld [vmem:[%s2827_s9 + $0x1d8] sm:$0xff] }
 0x217   :  { %1788 = vmatprep.subr.bf16.mxu0 %v1787_v39  ;;  %v1857_v39 = vpack.c.bf16 %v1115_v36, %v1114_v35 }
 0x21a   :  { %1790 = vmatpush3.bf16.msra.mxu0 %v1789_v44  ;;  %v1135_v44 = vld [vmem:[%s2827_s9 + $0x1e8] sm:$0xff] }
 0x21b   :  { %1792 = vmatprep.subr.bf16.mxu0 %v1791_v45  ;;  %v1861_v45 = vpack.c.bf16 %v1117_v42, %v1116_v41  ;;  %v1863_v46 = vpack.c.bf16 %v1135_v44, %v1134_v43  ;;  %v1417_v41 = vld [vmem:[#allocation2] ss:$0 sm:$0xff] }
 0x21c   :  { %v1419_v44 = vld [vmem:[%s2830_s12] ss:$0 sm:$0xff] }
 0x21e   :  { %1794 = vmatpush3.bf16.msra.mxu0 %v1793_v50  ;;  %v1137_v50 = vld [vmem:[%s2827_s9 + $0x1f8] sm:$0xff] }
 0x21f   :  { %1796 = vmatprep.subr.bf16.mxu0 %v1795_v51  ;;  %v1865_v51 = vpack.c.bf16 %v1119_v48, %v1118_v47  ;;  %v1867_v52 = vpack.c.bf16 %v1137_v50, %v1136_v49 }
 0x222   :  { %1798 = vmatpush3.bf16.msra.mxu0 %v1797_v57  ;;  %v1286_v57 = vld [vmem:[%s2829_s11] sm:$0xff] }
 0x223   :  { %1800 = vmatprep.subr.bf16.mxu0 %v1799_v59  ;;  %v1939_v59 = vmov 0.0|0.0   ;;  %v1872_v60 = vpack.c.bf16 %v1287_v58, %v1286_v57 }
 0x224   :  { %1871 = vmatprep.subr.bf16.mxu1 %v1939_v59 }
 0x225   :  { %1873 = vmatpush3.bf16.msra.mxu1 %v1872_v60 }
 0x226   :  { %1802 = vmatpush3.bf16.msra.mxu0 %v1801_v0  ;;  %1874 = vmatprep.subr.bf16.mxu1 %v1939_v59  ;;  %v1290_v0 = vld [vmem:[%s2829_s11 + $0x20] sm:$0xff] }
 0x227   :  { %1804 = vmatprep.subr.bf16.mxu0 %v1803_v3  ;;  %v1878_v3 = vpack.c.bf16 %v1291_v2, %v1290_v0 }
 0x229   :  { %1876 = vmatpush3.bf16.msra.mxu1 %v1875_v63 }
 0x22a   :  { %1806 = vmatpush3.bf16.msra.mxu0 %v1805_v7  ;;  %1877 = vmatprep.subr.bf16.mxu1 %v1939_v59  ;;  %v1295_v7 = vld [vmem:[%s2829_s11 + $0x48] sm:$0xff] }
 0x22b   :  { %1840 = vmatprep.subr.bf16.mxu0 %v1839_v10  ;;  %v1884_v9 = vpack.c.bf16 %v1295_v7, %v1294_v8  ;;  %v1296_v10 = vld [vmem:[%s2829_s11 + $0x50] sm:$0xff] }
 0x22c   :  { %v1887_v11 = vpack.c.bf16 %v1297_v54, %v1296_v10 }
 0x22d   :  { %1048 = vmatmul.mubr.f32.vlgmr.msra.gmra.mrb[4].mxu0 %v840_v15  ;;  %1879 = vmatpush3.bf16.msra.mxu1 %v1878_v3 }
 0x22e   :  { %1842 = vmatpush3.bf16.msra.mxu0 %v1841_v14  ;;  %1279 = vmatprep.mubr.f32.mxu0 %v841_v37  ;;  %v1132_v37 = vld [vmem:[%s2827_s9 + $0x1d0] sm:$0xff]  ;;  %v1890_v14 = vpack.c.bf16 %v1299_v13, %v1298_v12 }
 0x22f   :  { %1844 = vmatprep.subr.bf16.mxu0 %v1843_v16  ;;  %v1859_v40 = vpack.c.bf16 %v1133_v38, %v1132_v37  ;;  %1880 = vmatprep.subr.bf16.mxu1 %v1939_v59  ;;  %v1301_v16 = vld [vmem:[%s2829_s11 + $0x78] sm:$0xff] }
 0x231   :  { %1882 = vmatpush3.bf16.msra.mxu1 %v1881_v6 }
 0x232   :  { %1846 = vmatpush3.bf16.msra.mxu0 %v1845_v21  ;;  %1883 = vmatprep.subr.bf16.mxu1 %v1939_v59 }
 0x233   :  { %1848 = vmatprep.subr.bf16.mxu0 %v1847_v22 }
 0x235   :  { %1885 = vmatpush3.bf16.msra.mxu1 %v1884_v9 }
 0x236   :  { %1850 = vmatpush3.bf16.msra.mxu0 %v1849_v27  ;;  %1886 = vmatprep.subr.bf16.mxu1 %v1939_v59 }
 0x237   :  { %1852 = vmatprep.subr.bf16.mxu0 %v1851_v28 }
 0x239   :  { %1888 = vmatpush3.bf16.msra.mxu1 %v1887_v11 }
 0x23a   :  { %1854 = vmatpush3.bf16.msra.mxu0 %v1853_v33  ;;  %1889 = vmatprep.subr.bf16.mxu1 %v1939_v59  ;;  %v1941_v33 = vmov 0  }
 0x23b   :  { %1856 = vmatprep.subr.bf16.mxu0 %v1855_v34  ;;  %1912 = vset.pattern.permute.xlu1 %v1941_v33  ;;  %v1418_v34 = vld [vmem:[%s2828_s10] ss:$0 sm:$0xff]  ;;  %s1942_s10 = smov [#allocation3]  }
 0x23c   :  { %1913 = vset.pattern.permute.xlu0 %v1941_v33  ;;  %s1398_s3 = sshll.u32 %s1942_s10, 4  ;;  %s1399_s3 = int_to_ptr.vmem [resolvable:$true] %s1398_s3 }
 0x23d   :  { %1891 = vmatpush3.bf16.msra.mxu1 %v1890_v14  ;;  %s1914_s28 = scalar_lea.vmem %s1399_s3, 32  ;;  %p1919_p1 = scmp.lt.s32.totalorder %s1399_s3, %s1399_s3 }
 0x23e   :  { %1858 = vmatpush3.bf16.msra.mxu0 %v1857_v39  ;;  %1892 = vmatprep.subr.bf16.mxu1 %v1939_v59  ;;  %p1915_p0 = scmp.ne.s32.totalorder %s1399_s3, %s1914_s28  ;;  %p1920_p2 = scmp.lt.s32.totalorder %s1914_s28, %s1914_s28 }
 0x23f   :  { %1860 = vmatprep.subr.bf16.mxu0 %v1859_v40 }
 0x240   :  { %p1921_p3 = por %p1920_p2, %p1919_p1 }
 0x242   :  { %1862 = vmatpush3.bf16.msra.mxu0 %v1861_v45  ;;  %p1922_p4 = pnand %p1921_p3, %p1915_p0 }
 0x243   :  { %1864 = vmatprep.subr.bf16.mxu0 %v1863_v46 }
 0x246   :  { %1866 = vmatpush3.bf16.msra.mxu0 %v1865_v51 }
 0x247   :  { %1868 = vmatprep.subr.bf16.mxu0 %v1867_v52 }
 0x24a   :  { %1870 = vmatpush3.bf16.msra.mxu0 %v1869_v56 }
 0x24d   :  { %1280 = vmatmul.mubr.f32.vlgmr.msra.gmra.mrb[6].mxu0 %v840_v15  ;;  %v1300_v15 = vld [vmem:[%s2829_s11 + $0x70] sm:$0xff] }
 0x24e   :  { %v1893_v17 = vpack.c.bf16 %v1301_v16, %v1300_v15 }
 0x250   :  { %1894 = vmatpush3.bf16.msra.mxu1 %v1893_v17 }
 0x2e0   :  { %v1487_v18 = vpop.f32.mrb[2].mxu0  ;;  %v1557_v19 = vpop.f32.mrb[4].mxu1 }
 0x2e1   :  { %v1488_v20 = vpop.f32.mrb[3].mxu0  ;;  %v1558_v21 = vpop.f32.mrb[5].mxu1 }
 0x2e2   :  { %v1489_v22 = vadd.f32 %v1488_v20, %v1487_v18  ;;  %v1559_v23 = vadd.f32 %v1558_v21, %v1557_v19 }
 0x2e4   :  { %v980_v27 = vadd.f32 %v1489_v22, %v1415_v24  ;;  %v1212_v37 = vadd.f32 %v1559_v23, %v1418_v34 }
 0x300   :  { %v1522_v25 = vpop.f32.mrb[4].mxu0 }
 0x301   :  { %v1523_v26 = vpop.f32.mrb[5].mxu0 }
 0x302   :  { %v1524_v28 = vadd.f32 %v1523_v26, %v1522_v25 }
 0x304   :  { %v1050_v29 = vadd.f32 %v1524_v28, %v980_v27 }
 0x306   :  { %v1053_v1 = vmax.f32 %v1050_v29, 0.0 }
 0x308   :  { %v1061_v31 = vmul.f32 %v1416_v30, %v1053_v1 }
 0x30a   :  { %v1063_v32 = vsel %vm1062_vm2, %v1061_v31, 0.0 }
 0x30b   :  { %1064 = vadd.xlane.f32.xlu0 %v1063_v32 }
 0x320   :  { %v1592_v35 = vpop.f32.mrb[6].mxu0 }
 0x321   :  { %v1593_v36 = vpop.f32.mrb[7].mxu0 }
 0x322   :  { %v1594_v38 = vadd.f32 %v1593_v36, %v1592_v35 }
 0x324   :  { %v1282_v39 = vadd.f32 %v1594_v38, %v1212_v37 }
 0x326   :  { %v1285_v40 = vmax.f32 %v1282_v39, 0.0 }
 0x328   :  { %1645 = vmatmul.mubr.f32.vlgmr.msra.gmra.mrb[6].mxu1 %v1285_v40 }
 0x398   :  { %v1065_v42 = vpop.xlane.xlu0 %1064 }
 0x399   :  { %v1073_v43 = vadd.f32 %v1417_v41, %v1065_v42 }
 0x39b   :  { %1386 = vperm.xlu1 %1912, %v1073_v43  }
 0x3fb   :  { %v1375_v45 = vpop.f32.mrb[6].mxu1 }
 0x3fc   :  { %v1376_v46 = vadd.f32 %v1419_v44, %v1375_v45  ;;  %v1646_v47 = vpop.f32.mrb[7].mxu1 }
 0x3fe   :  { %v1380_v48 = vsel %vm1379_vm3, %v1376_v46, 0.0 }
 0x3ff   :  { %1381 = vadd.xlane.f32.xlu0 %v1380_v48 }
 0x41a   :  { %v1387_v49 = vpop.permute.xlu1 %1386 }
 0x41b   :  { %v1389_v51 = vadd.f32 %v1387_v49, %v1376_v46 }
 0x48c   :  { %v1382_v50 = vpop.xlane.xlu0 %1381 }
 0x48d   :  { %v1383_v52 = vmul.f32 0.16666667, %v1382_v50 }
 0x48f   :  { %v1390_v53 = vsub.f32 %v1389_v51, %v1383_v52 }
 0x491   :  { %1391 = vst.msk [vmem:[#allocation3] sm:$0x3] %vm1379_vm3, %v1390_v53 }
 0x492   :  { %1925 = shalt.err (!%p1922_p4)
}
 0x493   :  { %s1926_s0 = scalar_lea.hbm %s2831_s13, 32 }
 0x494   :  { %p1927_p5 = scmp.ne.s32.totalorder %s2831_s13, %s1926_s0  ;;  %p1930_p6 = scmp.lt.u32.totalorder %s1926_s0, %s2831_s13 }
 0x496   :  { %p1932_p7 = pnand %p1930_p6, %p1927_p5 }
 0x498   :  { %1935 = shalt.err (!%p1932_p7)
}
 0x499   :  { %1401 = dma.vmem_to_hbm [thread:$0]  %s1399_s3, 32, %s2831_s13, [#allocation4]  }
 0x49a   :  { %1936 = dma.done.wait [#allocation4], 32  }
 0x49b   :  { %1937 = vsyncadd [#allocation4], 4294967264 }
 0x49c   :  { %1405 = vsyncpa [#allocation4], 1 }

</bundles_post_ra>
